<compile_context>
chip_gen: v7x
topology: tpu7x:2x2x1
jax: 0.10.0
libtpu: 0.0.40
codegen_flags: <defaults>
</compile_context>

<pallas_src>
import numpy as np
import jax
import jax.numpy as jnp
from jax import lax
from jax.experimental import pallas as pl
from jax.experimental.pallas import tpu as pltpu


# (cin, cout, k, stride, padding) for encoder convs,
# (cin, cout, k, stride, output_padding) for decoder transposed convs.
ENC_CFG = [(1, 16, 5, 2, 1), (16, 8, 5, 2, 1), (8, 2, 3, 1, 1)]
DEC_CFG = [(2, 16, 5, 4, 0), (16, 8, 5, 4, 0), (8, 1, 3, 2, 1)]

_SLAB_COLS = 16      # max channel count over all layers
_ACT_OFF = 1         # activations live at scratch row offset 1 (== encoder conv padding)


def _round_up(n, m):
    return -(-n // m) * m


# ------------------------------ static planning ------------------------------

def _make_plan(l_in):
    """Static per-layer geometry + packed weight-slab row offsets."""
    plan, w_off, b_row, cur = [], 0, 0, l_in
    for (cin, cout, k, stride, pad) in ENC_CFG:
        assert pad == _ACT_OFF, "kernel assumes encoder conv padding == 1"
        l_out = (cur + 2 * pad - k) // stride + 1
        plan.append(dict(kind="conv", cin=cin, cout=cout, k=k, stride=stride,
                         l_in=cur, l_out=l_out, w_off=w_off, b_row=b_row))
        w_off += k * cin
        b_row += 1
        l_pool = l_out // 2
        plan.append(dict(kind="pool", c=cout, l_in=l_out, l_out=l_pool))
        cur = l_pool
    for i, (cin, cout, k, stride, out_pad) in enumerate(DEC_CFG):
        l_out = (cur - 1) * stride + k + out_pad
        lane_reduce = (cout == 1)          # final layer: do mul + lane-reduce, not a N=1 dot
        plan.append(dict(kind="deconv", cin=cin, cout=cout, k=k, stride=stride,
                         l_in=cur, l_out=l_out, w_off=w_off, b_row=b_row,
                         lane_reduce=lane_reduce, relu=(i + 1 < len(DEC_CFG))))
        w_off += k if lane_reduce else k * cin
        b_row += 1
        cur = l_out
    return plan, _round_up(w_off, 8), b_row, cur


def _pack_params(plan, enc_params, dec_params, slab_rows, n_bias):
    """Pack every layer's weights/biases into one weight slab + one bias slab."""
    w_slab = jnp.zeros((slab_rows, _SLAB_COLS), jnp.float32)
    b_slab = jnp.zeros((n_bias, _SLAB_COLS), jnp.float32)
    params = list(enc_params) + list(dec_params)
    pi = 0
    for layer in plan:
        if layer["kind"] == "pool":
            continue
        w, b = params[pi]
        pi += 1
        k, cin, cout, off = layer["k"], layer["cin"], layer["cout"], layer["w_off"]
        if layer["kind"] == "conv":
            # torch Conv1d weight (C_out, C_in, K) -> (K*C_in, C_out), tap-major rows
            wt = jnp.transpose(w, (2, 1, 0)).reshape(k * cin, cout).astype(jnp.float32)
            w_slab = w_slab.at[off:off + k * cin, 0:cout].set(wt)
        elif layer["lane_reduce"]:
            # torch ConvTranspose1d weight (C_in, 1, K) -> (K, C_in): one row per tap
            wt = jnp.transpose(w[:, 0, :], (1, 0)).astype(jnp.float32)
            w_slab = w_slab.at[off:off + k, 0:cin].set(wt)
        else:
            # torch ConvTranspose1d weight (C_in, C_out, K) -> (K*C_in, C_out)
            wt = jnp.transpose(w, (2, 0, 1)).reshape(k * cin, cout).astype(jnp.float32)
            w_slab = w_slab.at[off:off + k * cin, 0:cout].set(wt)
        b_slab = b_slab.at[layer["b_row"], 0:cout].set(b.astype(jnp.float32))
    return w_slab, b_slab


# ------------------------------ kernel helpers -------------------------------

def _read_tap_weight(w_ref, layer, t):
    cin, cout, off = layer["cin"], layer["cout"], layer["w_off"]
    if layer.get("lane_reduce", False):
        return w_ref[off + t:off + t + 1, 0:cin]                    # (1, C_in)
    return w_ref[off + t * cin:off + (t + 1) * cin, 0:cout]         # (C_in, C_out)


def _channel_mix(x_tap, w_t, layer):
    """One tap's channel mix: (L, C_in) -> (L, C_out)."""
    if layer.get("lane_reduce", False):                              # C_out == 1
        return jnp.sum(x_tap * w_t, axis=1, keepdims=True)
    if layer["cin"] == 1:                                            # outer product
        return x_tap * w_t
    return jnp.dot(x_tap, w_t, preferred_element_type=jnp.float32,
                   precision=lax.Precision.HIGHEST)


def _conv_relu(src, dst, w_ref, b_ref, layer):
    """Conv1d + bias + ReLU.  src holds the (zero-padded) input at rows [0, 1+L_in+...);
    writes the output to dst rows [1, 1+L_out)."""
    k, s, cin, cout, l_out = (layer["k"], layer["stride"], layer["cin"],
                              layer["cout"], layer["l_out"])
    acc = None
    for t in range(k):
        idx = pl.ds(t, l_out, stride=s) if s > 1 else pl.ds(t, l_out)
        x_t = src[idx, 0:cin]
        p = _channel_mix(x_t, _read_tap_weight(w_ref, layer, t), layer)
        acc = p if acc is None else acc + p
    y = jnp.maximum(acc + b_ref[layer["b_row"]:layer["b_row"] + 1, 0:cout], 0.0)
    dst[_ACT_OFF:_ACT_OFF + l_out, 0:cout] = y


def _maxpool2(src, dst, layer, zero_below):
    """MaxPool1d(2): two strided reads + max; also writes the zero pad rows the
    next conv layer will read."""
    c, l_out = layer["c"], layer["l_out"]
    a = src[pl.ds(_ACT_OFF, l_out, stride=2), 0:c]
    b = src[pl.ds(_ACT_OFF + 1, l_out, stride=2), 0:c]
    dst[0:_ACT_OFF, 0:c] = jnp.zeros((_ACT_OFF, c), jnp.float32)
    dst[_ACT_OFF:_ACT_OFF + l_out, 0:c] = jnp.maximum(a, b)
    if zero_below > 0:
        dst[_ACT_OFF + l_out:_ACT_OFF + l_out + zero_below, 0:c] = (
            jnp.zeros((zero_below, c), jnp.float32))


def _deconv(src, dst, w_ref, b_ref, layer, dst_off):
    """ConvTranspose1d (padding=0) + bias (+ReLU).  Output row q*stride + r only
    depends on taps t == r (mod stride), so each phase is a sum of (shifted)
    per-tap products and lands in dst with a single strided store."""
    k, s, cin, cout = layer["k"], layer["stride"], layer["cin"], layer["cout"]
    l_in, l_out = layer["l_in"], layer["l_out"]
    x = src[_ACT_OFF:_ACT_OFF + l_in, 0:cin]
    bias = b_ref[layer["b_row"]:layer["b_row"] + 1, 0:cout]
    taps = [_channel_mix(x, _read_tap_weight(w_ref, layer, t), layer) for t in range(k)]
    for r in range(s):
        n_r = -(-(l_out - r) // s)                     # number of output rows in phase r
        acc = None
        for t in range(r, k, s):
            shift = (t - r) // s                       # phase row q uses input row q - shift
            contrib = taps[t]
            pad_bot = n_r - l_in - shift
            if pad_bot < 0:
                contrib = contrib[:l_in + pad_bot, :]
                pad_bot = 0
            parts = []
            if shift > 0:
                parts.append(jnp.zeros((shift, cout), jnp.float32))
            parts.append(contrib)
            if pad_bot > 0:
                parts.append(jnp.zeros((pad_bot, cout), jnp.float32))
            v = jnp.concatenate(parts, axis=0) if len(parts) > 1 else parts[0]
            acc = v if acc is None else acc + v
        y = acc + bias
        if layer["relu"]:
            y = jnp.maximum(y, 0.0)
        dst[pl.ds(dst_off + r, n_r, stride=s), 0:cout] = y


def _build_kernel(plan, l_in):
    first = plan[0]
    max_read0 = (first["k"] - 1) + first["stride"] * (first["l_out"] - 1)
    zb0 = max(0, max_read0 - l_in)

    def kernel(x_ref, w_ref, b_ref, out_ref, sa, sb):
        # Stage this sample into scratch A at row offset 1; zero the conv pad rows.
        sa[0:_ACT_OFF, 0:1] = jnp.zeros((_ACT_OFF, 1), jnp.float32)
        sa[_ACT_OFF:_ACT_OFF + l_in, 0:1] = x_ref[...]
        if zb0 > 0:
            sa[_ACT_OFF + l_in:_ACT_OFF + l_in + zb0, 0:1] = jnp.zeros((zb0, 1), jnp.float32)

        src, other = sa, sb
        i = 0
        while i < len(plan):
            layer = plan[i]
            if layer["kind"] == "conv":
                pool = plan[i + 1]
                _conv_relu(src, other, w_ref, b_ref, layer)
                nxt = plan[i + 2] if i + 2 < len(plan) else None
                zb = 0
                if nxt is not None and nxt["kind"] == "conv":
                    max_read = (nxt["k"] - 1) + nxt["stride"] * (nxt["l_out"] - 1)
                    zb = max(0, max_read - pool["l_out"])
                _maxpool2(other, src, pool, zb)              # pooled result back in src
                i += 2
            else:
                last = (i == len(plan) - 1)
                dst = out_ref if last else other
                _deconv(src, dst, w_ref, b_ref, layer, dst_off=0 if last else _ACT_OFF)
                if not last:
                    src, other = other, src
                i += 1

    return kernel


# --------------------------------- wrapper -----------------------------------

@jax.jit
def cnn_ae_forward(x, enc_params, dec_params):
    """x: (B, L, 1) float -> (B, L_out, 1) float32 (CNN_AE.forward)."""
    batch, length, _ = x.shape
    plan, slab_rows, n_bias, l_final = _make_plan(length)
    w_slab, b_slab = _pack_params(plan, enc_params, dec_params, slab_rows, n_bias)

    max_len = max(max(l["l_in"], l["l_out"]) for l in plan)
    scratch_rows = _round_up(_ACT_OFF + max_len + 8, 8)

    flops = 2 * batch * sum(l["k"] * l["cin"] * l["cout"] * l["l_out"]
                            for l in plan if l["kind"] != "pool")
    bytes_accessed = 4 * (x.size + w_slab.size + b_slab.size + batch * l_final)

    kernel = _build_kernel(plan, length)

    out = pl.pallas_call(
        kernel,
        out_shape=jax.ShapeDtypeStruct((batch, l_final, 1), jnp.float32),
        grid_spec=pltpu.PrefetchScalarGridSpec(
            num_scalar_prefetch=0,
            grid=(batch,),
            in_specs=[
                pl.BlockSpec((None, length, 1), lambda b: (b, 0, 0)),
                pl.BlockSpec((slab_rows, _SLAB_COLS), lambda b: (0, 0)),
                pl.BlockSpec((n_bias, _SLAB_COLS), lambda b: (0, 0)),
            ],
            out_specs=pl.BlockSpec((None, l_final, 1), lambda b: (b, 0, 0)),
            scratch_shapes=[
                pltpu.VMEM((scratch_rows, _SLAB_COLS), jnp.float32),
                pltpu.VMEM((scratch_rows, _SLAB_COLS), jnp.float32),
            ],
        ),
        compiler_params=pltpu.CompilerParams(
            dimension_semantics=("parallel",),
            vmem_limit_bytes=8 * 1024 * 1024,
        ),
        cost_estimate=pl.CostEstimate(flops=flops, transcendentals=0,
                                      bytes_accessed=bytes_accessed),
    )(x.astype(jnp.float32), w_slab, b_slab)
    return out


# ---------------------------- pure-JAX reference -----------------------------

def _reference_forward(x, enc_params, dec_params):
    """Independent XLA reference with PyTorch Conv1d / MaxPool1d / ConvTranspose1d semantics."""
    h = jnp.transpose(x, (0, 2, 1))                        # Permute(0, 2, 1): (B, 1, L)
    for (cin, cout, k, stride, pad), (w, b) in zip(ENC_CFG, enc_params):
        h = lax.conv_general_dilated(
            h, w, window_strides=(stride,), padding=[(pad, pad)],
            dimension_numbers=("NCH", "OIH", "NCH"), precision=lax.Precision.HIGHEST)
        h = jnp.maximum(h + b[None, :, None], 0.0)
        l2 = h.shape[-1] // 2
        h = jnp.max(h[:, :, :2 * l2].reshape(h.shape[0], h.shape[1], l2, 2), axis=-1)
    for i, ((cin, cout, k, stride, out_pad), (w, b)) in enumerate(zip(DEC_CFG, dec_params)):
        w_t = jnp.transpose(jnp.flip(w, axis=-1), (1, 0, 2))   # (C_out, C_in, K)
        h = lax.conv_general_dilated(
            h, w_t, window_strides=(1,), padding=[(k - 1, k - 1 + out_pad)],
            lhs_dilation=(stride,), dimension_numbers=("NCH", "OIH", "NCH"),
            precision=lax.Precision.HIGHEST)
        h = h + b[None, :, None]
        if i < len(DEC_CFG) - 1:
            h = jnp.maximum(h, 0.0)
    return jnp.transpose(h, (0, 2, 1))                     # Permute(0, 2, 1): (B, L_out, 1)


if __name__ == "__main__":
    B, L = 2, 128
    keys = iter(jax.random.split(jax.random.PRNGKey(0), 16))

    def _uniform(key, shape, fan_in, gain):
        bound = gain / float(np.sqrt(fan_in))
        return jax.random.uniform(key, shape, jnp.float32, -bound, bound)

    enc_params = []
    for (cin, cout, k, stride, pad) in ENC_CFG:
        w = _uniform(next(keys), (cout, cin, k), cin * k, 2.0)   # torch Conv1d weight layout
        b = _uniform(next(keys), (cout,), cin * k, 1.0)
        enc_params.append((w, b))
    dec_params = []
    for (cin, cout, k, stride, out_pad) in DEC_CFG:
        w = _uniform(next(keys), (cin, cout, k), cin * k, 2.0)   # torch ConvTranspose1d weight layout
        b = _uniform(next(keys), (cout,), cin * k, 1.0)
        dec_params.append((w, b))

    x = jax.random.normal(next(keys), (B, L, 1), jnp.float32)

    out = cnn_ae_forward(x, enc_params, dec_params)
    out = jax.block_until_ready(out)

    ref = _reference_forward(x, enc_params, dec_params)
    assert out.shape == ref.shape, (out.shape, ref.shape)
    max_err = float(jnp.max(jnp.abs(out - ref)))
    assert max_err < 2e-2, max_err
    print("KERNEL_OK")
</pallas_src>

<mosaic_0001>
module attributes {stable_mosaic.version = 11 : i64} {
  func.func @kernel(%arg0: i32, %arg1: memref<1x128x1xf32, #tpu.memory_space<vmem>>, %arg2: memref<208x16xf32, #tpu.memory_space<vmem>>, %arg3: memref<6x16xf32, #tpu.memory_space<vmem>>, %arg4: memref<1x108x1xf32, #tpu.memory_space<vmem>>, %arg5: memref<144x16xf32, #tpu.memory_space<vmem>>, %arg6: memref<144x16xf32, #tpu.memory_space<vmem>>) attributes {dimension_semantics = [#tpu.dimension_semantics<parallel>], iteration_bounds = array<i64: 2>, scalar_prefetch = 0 : i64, scratch_operands = 2 : i64, tpu.core_type = #tpu.core_type<tc>, window_params = [{transform_indices = @transform_0, window_bounds = array<i64: 1, 128, 1>}, {pipeline_mode = #tpu.pipeline_mode<synchronous>, transform_indices = @transform_1, window_bounds = array<i64: 208, 16>}, {pipeline_mode = #tpu.pipeline_mode<synchronous>, transform_indices = @transform_2, window_bounds = array<i64: 6, 16>}, {transform_indices = @transform_3, window_bounds = array<i64: 1, 108, 1>}]} {
    %cst = arith.constant 0.000000e+00 : f32
    %0 = vector.broadcast %cst : f32 to vector<1x1xf32>
    %c0 = arith.constant 0 : index
    %c0_0 = arith.constant 0 : index
    %1 = vector.load %arg5[%c0, %c0_0] : memref<144x16xf32, #tpu.memory_space<vmem>>, vector<1x1xf32>
    tpu.vector_store %arg5[%c0, %c0_0], %0 {strides = array<i32>} : memref<144x16xf32, #tpu.memory_space<vmem>>, vector<1x1xf32>,
    %c0_1 = arith.constant 0 : index
    %c0_2 = arith.constant 0 : index
    %c0_3 = arith.constant 0 : index
    %2 = vector.load %arg1[%c0_1, %c0_2, %c0_3] : memref<1x128x1xf32, #tpu.memory_space<vmem>>, vector<1x128x1xf32>
    %3 = vector.shape_cast %2 : vector<1x128x1xf32> to vector<128x1xf32>
    %c1 = arith.constant 1 : index
    %c0_4 = arith.constant 0 : index
    %4 = vector.load %arg5[%c1, %c0_4] : memref<144x16xf32, #tpu.memory_space<vmem>>, vector<128x1xf32>
    tpu.vector_store %arg5[%c1, %c0_4], %3 {strides = array<i32>} : memref<144x16xf32, #tpu.memory_space<vmem>>, vector<128x1xf32>,
    %c0_5 = arith.constant 0 : index
    %c0_6 = arith.constant 0 : index
    %5 = tpu.strided_load %arg5[%c0_5, %c0_6] {strides = array<i32: 2, 1>} : memref<144x16xf32, #tpu.memory_space<vmem>>, vector<63x1xf32>
    %c0_7 = arith.constant 0 : index
    %c0_8 = arith.constant 0 : index
    %6 = vector.load %arg2[%c0_7, %c0_8] : memref<208x16xf32, #tpu.memory_space<vmem>>, vector<1x16xf32>
    %7 = vector.broadcast %5 : vector<63x1xf32> to vector<63x16xf32>
    %8 = vector.broadcast %6 : vector<1x16xf32> to vector<63x16xf32>
    %9 = arith.mulf %7, %8 : vector<63x16xf32>
    %c1_9 = arith.constant 1 : index
    %c0_10 = arith.constant 0 : index
    %10 = tpu.strided_load %arg5[%c1_9, %c0_10] {strides = array<i32: 2, 1>} : memref<144x16xf32, #tpu.memory_space<vmem>>, vector<63x1xf32>
    %c1_11 = arith.constant 1 : index
    %c0_12 = arith.constant 0 : index
    %11 = vector.load %arg2[%c1_11, %c0_12] : memref<208x16xf32, #tpu.memory_space<vmem>>, vector<1x16xf32>
    %12 = vector.broadcast %10 : vector<63x1xf32> to vector<63x16xf32>
    %13 = vector.broadcast %11 : vector<1x16xf32> to vector<63x16xf32>
    %14 = arith.mulf %12, %13 : vector<63x16xf32>
    %15 = arith.addf %9, %14 : vector<63x16xf32>
    %c2 = arith.constant 2 : index
    %c0_13 = arith.constant 0 : index
    %16 = tpu.strided_load %arg5[%c2, %c0_13] {strides = array<i32: 2, 1>} : memref<144x16xf32, #tpu.memory_space<vmem>>, vector<63x1xf32>
    %c2_14 = arith.constant 2 : index
    %c0_15 = arith.constant 0 : index
    %17 = vector.load %arg2[%c2_14, %c0_15] : memref<208x16xf32, #tpu.memory_space<vmem>>, vector<1x16xf32>
    %18 = vector.broadcast %16 : vector<63x1xf32> to vector<63x16xf32>
    %19 = vector.broadcast %17 : vector<1x16xf32> to vector<63x16xf32>
    %20 = arith.mulf %18, %19 : vector<63x16xf32>
    %21 = arith.addf %15, %20 : vector<63x16xf32>
    %c3 = arith.constant 3 : index
    %c0_16 = arith.constant 0 : index
    %22 = tpu.strided_load %arg5[%c3, %c0_16] {strides = array<i32: 2, 1>} : memref<144x16xf32, #tpu.memory_space<vmem>>, vector<63x1xf32>
    %c3_17 = arith.constant 3 : index
    %c0_18 = arith.constant 0 : index
    %23 = vector.load %arg2[%c3_17, %c0_18] : memref<208x16xf32, #tpu.memory_space<vmem>>, vector<1x16xf32>
    %24 = vector.broadcast %22 : vector<63x1xf32> to vector<63x16xf32>
    %25 = vector.broadcast %23 : vector<1x16xf32> to vector<63x16xf32>
    %26 = arith.mulf %24, %25 : vector<63x16xf32>
    %27 = arith.addf %21, %26 : vector<63x16xf32>
    %c4 = arith.constant 4 : index
    %c0_19 = arith.constant 0 : index
    %28 = tpu.strided_load %arg5[%c4, %c0_19] {strides = array<i32: 2, 1>} : memref<144x16xf32, #tpu.memory_space<vmem>>, vector<63x1xf32>
    %c4_20 = arith.constant 4 : index
    %c0_21 = arith.constant 0 : index
    %29 = vector.load %arg2[%c4_20, %c0_21] : memref<208x16xf32, #tpu.memory_space<vmem>>, vector<1x16xf32>
    %30 = vector.broadcast %28 : vector<63x1xf32> to vector<63x16xf32>
    %31 = vector.broadcast %29 : vector<1x16xf32> to vector<63x16xf32>
    %32 = arith.mulf %30, %31 : vector<63x16xf32>
    %33 = arith.addf %27, %32 : vector<63x16xf32>
    %c0_22 = arith.constant 0 : index
    %c0_23 = arith.constant 0 : index
    %34 = vector.load %arg3[%c0_22, %c0_23] : memref<6x16xf32, #tpu.memory_space<vmem>>, vector<1x16xf32>
    %35 = vector.broadcast %34 : vector<1x16xf32> to vector<63x16xf32>
    %36 = arith.addf %33, %35 : vector<63x16xf32>
    %cst_24 = arith.constant 0.000000e+00 : f32
    %37 = vector.broadcast %cst_24 : f32 to vector<63x16xf32>
    %38 = arith.maximumf %36, %37 : vector<63x16xf32>
    %c1_25 = arith.constant 1 : index
    %c0_26 = arith.constant 0 : index
    %39 = vector.load %arg6[%c1_25, %c0_26] : memref<144x16xf32, #tpu.memory_space<vmem>>, vector<63x16xf32>
    tpu.vector_store %arg6[%c1_25, %c0_26], %38 {strides = array<i32>} : memref<144x16xf32, #tpu.memory_space<vmem>>, vector<63x16xf32>,
    %c1_27 = arith.constant 1 : index
    %c0_28 = arith.constant 0 : index
    %40 = tpu.strided_load %arg6[%c1_27, %c0_28] {strides = array<i32: 2, 1>} : memref<144x16xf32, #tpu.memory_space<vmem>>, vector<31x16xf32>
    %c2_29 = arith.constant 2 : index
    %c0_30 = arith.constant 0 : index
    %41 = tpu.strided_load %arg6[%c2_29, %c0_30] {strides = array<i32: 2, 1>} : memref<144x16xf32, #tpu.memory_space<vmem>>, vector<31x16xf32>
    %cst_31 = arith.constant 0.000000e+00 : f32
    %42 = vector.broadcast %cst_31 : f32 to vector<1x16xf32>
    %c0_32 = arith.constant 0 : index
    %c0_33 = arith.constant 0 : index
    %43 = vector.load %arg5[%c0_32, %c0_33] : memref<144x16xf32, #tpu.memory_space<vmem>>, vector<1x16xf32>
    tpu.vector_store %arg5[%c0_32, %c0_33], %42 {strides = array<i32>} : memref<144x16xf32, #tpu.memory_space<vmem>>, vector<1x16xf32>,
    %44 = arith.maximumf %40, %41 : vector<31x16xf32>
    %c1_34 = arith.constant 1 : index
    %c0_35 = arith.constant 0 : index
    %45 = vector.load %arg5[%c1_34, %c0_35] : memref<144x16xf32, #tpu.memory_space<vmem>>, vector<31x16xf32>
    tpu.vector_store %arg5[%c1_34, %c0_35], %44 {strides = array<i32>} : memref<144x16xf32, #tpu.memory_space<vmem>>, vector<31x16xf32>,
    %cst_36 = arith.constant 0.000000e+00 : f32
    %46 = vector.broadcast %cst_36 : f32 to vector<1x16xf32>
    %c32 = arith.constant 32 : index
    %c0_37 = arith.constant 0 : index
    %47 = vector.load %arg5[%c32, %c0_37] : memref<144x16xf32, #tpu.memory_space<vmem>>, vector<1x16xf32>
    tpu.vector_store %arg5[%c32, %c0_37], %46 {strides = array<i32>} : memref<144x16xf32, #tpu.memory_space<vmem>>, vector<1x16xf32>,
    %c0_38 = arith.constant 0 : index
    %c0_39 = arith.constant 0 : index
    %48 = tpu.strided_load %arg5[%c0_38, %c0_39] {strides = array<i32: 2, 1>} : memref<144x16xf32, #tpu.memory_space<vmem>>, vector<15x16xf32>
    %c5 = arith.constant 5 : index
    %c0_40 = arith.constant 0 : index
    %49 = vector.load %arg2[%c5, %c0_40] : memref<208x16xf32, #tpu.memory_space<vmem>>, vector<16x8xf32>
    %cst_41 = arith.constant dense<0.000000e+00> : vector<15x8xf32>
    %50 = tpu.matmul %48, %49, %cst_41 {dimension_numbers = #tpu.dot_dimension_numbers<[1], [0], [0], [1], [0, 0, 1, 1], [], []>, precision = #tpu.contract_precision<fp32>} : vector<15x16xf32>, vector<16x8xf32>, vector<15x8xf32> -> vector<15x8xf32>
    %c1_42 = arith.constant 1 : index
    %c0_43 = arith.constant 0 : index
    %51 = tpu.strided_load %arg5[%c1_42, %c0_43] {strides = array<i32: 2, 1>} : memref<144x16xf32, #tpu.memory_space<vmem>>, vector<15x16xf32>
    %c21 = arith.constant 21 : index
    %c0_44 = arith.constant 0 : index
    %52 = vector.load %arg2[%c21, %c0_44] : memref<208x16xf32, #tpu.memory_space<vmem>>, vector<16x8xf32>
    %cst_45 = arith.constant dense<0.000000e+00> : vector<15x8xf32>
    %53 = tpu.matmul %51, %52, %cst_45 {dimension_numbers = #tpu.dot_dimension_numbers<[1], [0], [0], [1], [0, 0, 1, 1], [], []>, precision = #tpu.contract_precision<fp32>} : vector<15x16xf32>, vector<16x8xf32>, vector<15x8xf32> -> vector<15x8xf32>
    %54 = arith.addf %50, %53 : vector<15x8xf32>
    %c2_46 = arith.constant 2 : index
    %c0_47 = arith.constant 0 : index
    %55 = tpu.strided_load %arg5[%c2_46, %c0_47] {strides = array<i32: 2, 1>} : memref<144x16xf32, #tpu.memory_space<vmem>>, vector<15x16xf32>
    %c37 = arith.constant 37 : index
    %c0_48 = arith.constant 0 : index
    %56 = vector.load %arg2[%c37, %c0_48] : memref<208x16xf32, #tpu.memory_space<vmem>>, vector<16x8xf32>
    %cst_49 = arith.constant dense<0.000000e+00> : vector<15x8xf32>
    %57 = tpu.matmul %55, %56, %cst_49 {dimension_numbers = #tpu.dot_dimension_numbers<[1], [0], [0], [1], [0, 0, 1, 1], [], []>, precision = #tpu.contract_precision<fp32>} : vector<15x16xf32>, vector<16x8xf32>, vector<15x8xf32> -> vector<15x8xf32>
    %58 = arith.addf %54, %57 : vector<15x8xf32>
    %c3_50 = arith.constant 3 : index
    %c0_51 = arith.constant 0 : index
    %59 = tpu.strided_load %arg5[%c3_50, %c0_51] {strides = array<i32: 2, 1>} : memref<144x16xf32, #tpu.memory_space<vmem>>, vector<15x16xf32>
    %c53 = arith.constant 53 : index
    %c0_52 = arith.constant 0 : index
    %60 = vector.load %arg2[%c53, %c0_52] : memref<208x16xf32, #tpu.memory_space<vmem>>, vector<16x8xf32>
    %cst_53 = arith.constant dense<0.000000e+00> : vector<15x8xf32>
    %61 = tpu.matmul %59, %60, %cst_53 {dimension_numbers = #tpu.dot_dimension_numbers<[1], [0], [0], [1], [0, 0, 1, 1], [], []>, precision = #tpu.contract_precision<fp32>} : vector<15x16xf32>, vector<16x8xf32>, vector<15x8xf32> -> vector<15x8xf32>
    %62 = arith.addf %58, %61 : vector<15x8xf32>
    %c4_54 = arith.constant 4 : index
    %c0_55 = arith.constant 0 : index
    %63 = tpu.strided_load %arg5[%c4_54, %c0_55] {strides = array<i32: 2, 1>} : memref<144x16xf32, #tpu.memory_space<vmem>>, vector<15x16xf32>
    %c69 = arith.constant 69 : index
    %c0_56 = arith.constant 0 : index
    %64 = vector.load %arg2[%c69, %c0_56] : memref<208x16xf32, #tpu.memory_space<vmem>>, vector<16x8xf32>
    %cst_57 = arith.constant dense<0.000000e+00> : vector<15x8xf32>
    %65 = tpu.matmul %63, %64, %cst_57 {dimension_numbers = #tpu.dot_dimension_numbers<[1], [0], [0], [1], [0, 0, 1, 1], [], []>, precision = #tpu.contract_precision<fp32>} : vector<15x16xf32>, vector<16x8xf32>, vector<15x8xf32> -> vector<15x8xf32>
    %66 = arith.addf %62, %65 : vector<15x8xf32>
    %c1_58 = arith.constant 1 : index
    %c0_59 = arith.constant 0 : index
    %67 = vector.load %arg3[%c1_58, %c0_59] : memref<6x16xf32, #tpu.memory_space<vmem>>, vector<1x8xf32>
    %68 = vector.broadcast %67 : vector<1x8xf32> to vector<15x8xf32>
    %69 = arith.addf %66, %68 : vector<15x8xf32>
    %cst_60 = arith.constant 0.000000e+00 : f32
    %70 = vector.broadcast %cst_60 : f32 to vector<15x8xf32>
    %71 = arith.maximumf %69, %70 : vector<15x8xf32>
    %c1_61 = arith.constant 1 : index
    %c0_62 = arith.constant 0 : index
    %72 = vector.load %arg6[%c1_61, %c0_62] : memref<144x16xf32, #tpu.memory_space<vmem>>, vector<15x8xf32>
    tpu.vector_store %arg6[%c1_61, %c0_62], %71 {strides = array<i32>} : memref<144x16xf32, #tpu.memory_space<vmem>>, vector<15x8xf32>,
    %c1_63 = arith.constant 1 : index
    %c0_64 = arith.constant 0 : index
    %73 = tpu.strided_load %arg6[%c1_63, %c0_64] {strides = array<i32: 2, 1>} : memref<144x16xf32, #tpu.memory_space<vmem>>, vector<7x8xf32>
    %c2_65 = arith.constant 2 : index
    %c0_66 = arith.constant 0 : index
    %74 = tpu.strided_load %arg6[%c2_65, %c0_66] {strides = array<i32: 2, 1>} : memref<144x16xf32, #tpu.memory_space<vmem>>, vector<7x8xf32>
    %cst_67 = arith.constant 0.000000e+00 : f32
    %75 = vector.broadcast %cst_67 : f32 to vector<1x8xf32>
    %c0_68 = arith.constant 0 : index
    %c0_69 = arith.constant 0 : index
    %76 = vector.load %arg5[%c0_68, %c0_69] : memref<144x16xf32, #tpu.memory_space<vmem>>, vector<1x8xf32>
    tpu.vector_store %arg5[%c0_68, %c0_69], %75 {strides = array<i32>} : memref<144x16xf32, #tpu.memory_space<vmem>>, vector<1x8xf32>,
    %77 = arith.maximumf %73, %74 : vector<7x8xf32>
    %c1_70 = arith.constant 1 : index
    %c0_71 = arith.constant 0 : index
    %78 = vector.load %arg5[%c1_70, %c0_71] : memref<144x16xf32, #tpu.memory_space<vmem>>, vector<7x8xf32>
    tpu.vector_store %arg5[%c1_70, %c0_71], %77 {strides = array<i32>} : memref<144x16xf32, #tpu.memory_space<vmem>>, vector<7x8xf32>,
    %cst_72 = arith.constant 0.000000e+00 : f32
    %79 = vector.broadcast %cst_72 : f32 to vector<1x8xf32>
    %c8 = arith.constant 8 : index
    %c0_73 = arith.constant 0 : index
    %80 = vector.load %arg5[%c8, %c0_73] : memref<144x16xf32, #tpu.memory_space<vmem>>, vector<1x8xf32>
    tpu.vector_store %arg5[%c8, %c0_73], %79 {strides = array<i32>} : memref<144x16xf32, #tpu.memory_space<vmem>>, vector<1x8xf32>,
    %c0_74 = arith.constant 0 : index
    %c0_75 = arith.constant 0 : index
    %81 = vector.load %arg5[%c0_74, %c0_75] : memref<144x16xf32, #tpu.memory_space<vmem>>, vector<7x8xf32>
    %c85 = arith.constant 85 : index
    %c0_76 = arith.constant 0 : index
    %82 = vector.load %arg2[%c85, %c0_76] : memref<208x16xf32, #tpu.memory_space<vmem>>, vector<8x2xf32>
    %cst_77 = arith.constant dense<0.000000e+00> : vector<7x2xf32>
    %83 = tpu.matmul %81, %82, %cst_77 {dimension_numbers = #tpu.dot_dimension_numbers<[1], [0], [0], [1], [0, 0, 1, 1], [], []>, precision = #tpu.contract_precision<fp32>} : vector<7x8xf32>, vector<8x2xf32>, vector<7x2xf32> -> vector<7x2xf32>
    %c1_78 = arith.constant 1 : index
    %c0_79 = arith.constant 0 : index
    %84 = vector.load %arg5[%c1_78, %c0_79] : memref<144x16xf32, #tpu.memory_space<vmem>>, vector<7x8xf32>
    %c93 = arith.constant 93 : index
    %c0_80 = arith.constant 0 : index
    %85 = vector.load %arg2[%c93, %c0_80] : memref<208x16xf32, #tpu.memory_space<vmem>>, vector<8x2xf32>
    %cst_81 = arith.constant dense<0.000000e+00> : vector<7x2xf32>
    %86 = tpu.matmul %84, %85, %cst_81 {dimension_numbers = #tpu.dot_dimension_numbers<[1], [0], [0], [1], [0, 0, 1, 1], [], []>, precision = #tpu.contract_precision<fp32>} : vector<7x8xf32>, vector<8x2xf32>, vector<7x2xf32> -> vector<7x2xf32>
    %87 = arith.addf %83, %86 : vector<7x2xf32>
    %c2_82 = arith.constant 2 : index
    %c0_83 = arith.constant 0 : index
    %88 = vector.load %arg5[%c2_82, %c0_83] : memref<144x16xf32, #tpu.memory_space<vmem>>, vector<7x8xf32>
    %c101 = arith.constant 101 : index
    %c0_84 = arith.constant 0 : index
    %89 = vector.load %arg2[%c101, %c0_84] : memref<208x16xf32, #tpu.memory_space<vmem>>, vector<8x2xf32>
    %cst_85 = arith.constant dense<0.000000e+00> : vector<7x2xf32>
    %90 = tpu.matmul %88, %89, %cst_85 {dimension_numbers = #tpu.dot_dimension_numbers<[1], [0], [0], [1], [0, 0, 1, 1], [], []>, precision = #tpu.contract_precision<fp32>} : vector<7x8xf32>, vector<8x2xf32>, vector<7x2xf32> -> vector<7x2xf32>
    %91 = arith.addf %87, %90 : vector<7x2xf32>
    %c2_86 = arith.constant 2 : index
    %c0_87 = arith.constant 0 : index
    %92 = vector.load %arg3[%c2_86, %c0_87] : memref<6x16xf32, #tpu.memory_space<vmem>>, vector<1x2xf32>
    %93 = vector.broadcast %92 : vector<1x2xf32> to vector<7x2xf32>
    %94 = arith.addf %91, %93 : vector<7x2xf32>
    %cst_88 = arith.constant 0.000000e+00 : f32
    %95 = vector.broadcast %cst_88 : f32 to vector<7x2xf32>
    %96 = arith.maximumf %94, %95 : vector<7x2xf32>
    %c1_89 = arith.constant 1 : index
    %c0_90 = arith.constant 0 : index
    %97 = vector.load %arg6[%c1_89, %c0_90] : memref<144x16xf32, #tpu.memory_space<vmem>>, vector<7x2xf32>
    tpu.vector_store %arg6[%c1_89, %c0_90], %96 {strides = array<i32>} : memref<144x16xf32, #tpu.memory_space<vmem>>, vector<7x2xf32>,
    %c1_91 = arith.constant 1 : index
    %c0_92 = arith.constant 0 : index
    %98 = tpu.strided_load %arg6[%c1_91, %c0_92] {strides = array<i32: 2, 1>} : memref<144x16xf32, #tpu.memory_space<vmem>>, vector<3x2xf32>
    %c2_93 = arith.constant 2 : index
    %c0_94 = arith.constant 0 : index
    %99 = tpu.strided_load %arg6[%c2_93, %c0_94] {strides = array<i32: 2, 1>} : memref<144x16xf32, #tpu.memory_space<vmem>>, vector<3x2xf32>
    %cst_95 = arith.constant 0.000000e+00 : f32
    %100 = vector.broadcast %cst_95 : f32 to vector<1x2xf32>
    %c0_96 = arith.constant 0 : index
    %c0_97 = arith.constant 0 : index
    %101 = vector.load %arg5[%c0_96, %c0_97] : memref<144x16xf32, #tpu.memory_space<vmem>>, vector<1x2xf32>
    tpu.vector_store %arg5[%c0_96, %c0_97], %100 {strides = array<i32>} : memref<144x16xf32, #tpu.memory_space<vmem>>, vector<1x2xf32>,
    %102 = arith.maximumf %98, %99 : vector<3x2xf32>
    %c1_98 = arith.constant 1 : index
    %c0_99 = arith.constant 0 : index
    %103 = vector.load %arg5[%c1_98, %c0_99] : memref<144x16xf32, #tpu.memory_space<vmem>>, vector<3x2xf32>
    tpu.vector_store %arg5[%c1_98, %c0_99], %102 {strides = array<i32>} : memref<144x16xf32, #tpu.memory_space<vmem>>, vector<3x2xf32>,
    %c1_100 = arith.constant 1 : index
    %c0_101 = arith.constant 0 : index
    %104 = vector.load %arg5[%c1_100, %c0_101] : memref<144x16xf32, #tpu.memory_space<vmem>>, vector<3x2xf32>
    %c3_102 = arith.constant 3 : index
    %c0_103 = arith.constant 0 : index
    %105 = vector.load %arg3[%c3_102, %c0_103] : memref<6x16xf32, #tpu.memory_space<vmem>>, vector<1x16xf32>
    %c109 = arith.constant 109 : index
    %c0_104 = arith.constant 0 : index
    %106 = vector.load %arg2[%c109, %c0_104] : memref<208x16xf32, #tpu.memory_space<vmem>>, vector<2x16xf32>
    %cst_105 = arith.constant dense<0.000000e+00> : vector<3x16xf32>
    %107 = tpu.matmul %104, %106, %cst_105 {dimension_numbers = #tpu.dot_dimension_numbers<[1], [0], [0], [1], [0, 0, 1, 1], [], []>, precision = #tpu.contract_precision<fp32>} : vector<3x2xf32>, vector<2x16xf32>, vector<3x16xf32> -> vector<3x16xf32>
    %c111 = arith.constant 111 : index
    %c0_106 = arith.constant 0 : index
    %108 = vector.load %arg2[%c111, %c0_106] : memref<208x16xf32, #tpu.memory_space<vmem>>, vector<2x16xf32>
    %cst_107 = arith.constant dense<0.000000e+00> : vector<3x16xf32>
    %109 = tpu.matmul %104, %108, %cst_107 {dimension_numbers = #tpu.dot_dimension_numbers<[1], [0], [0], [1], [0, 0, 1, 1], [], []>, precision = #tpu.contract_precision<fp32>} : vector<3x2xf32>, vector<2x16xf32>, vector<3x16xf32> -> vector<3x16xf32>
    %c113 = arith.constant 113 : index
    %c0_108 = arith.constant 0 : index
    %110 = vector.load %arg2[%c113, %c0_108] : memref<208x16xf32, #tpu.memory_space<vmem>>, vector<2x16xf32>
    %cst_109 = arith.constant dense<0.000000e+00> : vector<3x16xf32>
    %111 = tpu.matmul %104, %110, %cst_109 {dimension_numbers = #tpu.dot_dimension_numbers<[1], [0], [0], [1], [0, 0, 1, 1], [], []>, precision = #tpu.contract_precision<fp32>} : vector<3x2xf32>, vector<2x16xf32>, vector<3x16xf32> -> vector<3x16xf32>
    %c115 = arith.constant 115 : index
    %c0_110 = arith.constant 0 : index
    %112 = vector.load %arg2[%c115, %c0_110] : memref<208x16xf32, #tpu.memory_space<vmem>>, vector<2x16xf32>
    %cst_111 = arith.constant dense<0.000000e+00> : vector<3x16xf32>
    %113 = tpu.matmul %104, %112, %cst_111 {dimension_numbers = #tpu.dot_dimension_numbers<[1], [0], [0], [1], [0, 0, 1, 1], [], []>, precision = #tpu.contract_precision<fp32>} : vector<3x2xf32>, vector<2x16xf32>, vector<3x16xf32> -> vector<3x16xf32>
    %c117 = arith.constant 117 : index
    %c0_112 = arith.constant 0 : index
    %114 = vector.load %arg2[%c117, %c0_112] : memref<208x16xf32, #tpu.memory_space<vmem>>, vector<2x16xf32>
    %cst_113 = arith.constant dense<0.000000e+00> : vector<3x16xf32>
    %115 = tpu.matmul %104, %114, %cst_113 {dimension_numbers = #tpu.dot_dimension_numbers<[1], [0], [0], [1], [0, 0, 1, 1], [], []>, precision = #tpu.contract_precision<fp32>} : vector<3x2xf32>, vector<2x16xf32>, vector<3x16xf32> -> vector<3x16xf32>
    %cst_114 = arith.constant 0.000000e+00 : f32
    %116 = vector.broadcast %cst_114 : f32 to vector<1x16xf32>
    %117 = tpu.concatenate %107, %116 in 0 : vector<3x16xf32>, vector<1x16xf32> -> vector<4x16xf32>
    %cst_115 = arith.constant 0.000000e+00 : f32
    %118 = vector.broadcast %cst_115 : f32 to vector<1x16xf32>
    %119 = tpu.concatenate %118, %115 in 0 : vector<1x16xf32>, vector<3x16xf32> -> vector<4x16xf32>
    %120 = arith.addf %117, %119 : vector<4x16xf32>
    %121 = vector.broadcast %105 : vector<1x16xf32> to vector<4x16xf32>
    %122 = arith.addf %120, %121 : vector<4x16xf32>
    %cst_116 = arith.constant 0.000000e+00 : f32
    %123 = vector.broadcast %cst_116 : f32 to vector<4x16xf32>
    %124 = arith.maximumf %122, %123 : vector<4x16xf32>
    %c1_117 = arith.constant 1 : index
    %c0_118 = arith.constant 0 : index
    %125 = tpu.strided_load %arg6[%c1_117, %c0_118] {strides = array<i32: 4, 1>} : memref<144x16xf32, #tpu.memory_space<vmem>>, vector<4x16xf32>
    tpu.strided_store %arg6[%c1_117, %c0_118], %124 {strides = array<i32: 4, 1>} : memref<144x16xf32, #tpu.memory_space<vmem>>, vector<4x16xf32>
    %126 = vector.broadcast %105 : vector<1x16xf32> to vector<3x16xf32>
    %127 = arith.addf %109, %126 : vector<3x16xf32>
    %cst_119 = arith.constant 0.000000e+00 : f32
    %128 = vector.broadcast %cst_119 : f32 to vector<3x16xf32>
    %129 = arith.maximumf %127, %128 : vector<3x16xf32>
    %c2_120 = arith.constant 2 : index
    %c0_121 = arith.constant 0 : index
    %130 = tpu.strided_load %arg6[%c2_120, %c0_121] {strides = array<i32: 4, 1>} : memref<144x16xf32, #tpu.memory_space<vmem>>, vector<3x16xf32>
    tpu.strided_store %arg6[%c2_120, %c0_121], %129 {strides = array<i32: 4, 1>} : memref<144x16xf32, #tpu.memory_space<vmem>>, vector<3x16xf32>
    %131 = vector.broadcast %105 : vector<1x16xf32> to vector<3x16xf32>
    %132 = arith.addf %111, %131 : vector<3x16xf32>
    %cst_122 = arith.constant 0.000000e+00 : f32
    %133 = vector.broadcast %cst_122 : f32 to vector<3x16xf32>
    %134 = arith.maximumf %132, %133 : vector<3x16xf32>
    %c3_123 = arith.constant 3 : index
    %c0_124 = arith.constant 0 : index
    %135 = tpu.strided_load %arg6[%c3_123, %c0_124] {strides = array<i32: 4, 1>} : memref<144x16xf32, #tpu.memory_space<vmem>>, vector<3x16xf32>
    tpu.strided_store %arg6[%c3_123, %c0_124], %134 {strides = array<i32: 4, 1>} : memref<144x16xf32, #tpu.memory_space<vmem>>, vector<3x16xf32>
    %136 = vector.broadcast %105 : vector<1x16xf32> to vector<3x16xf32>
    %137 = arith.addf %113, %136 : vector<3x16xf32>
    %cst_125 = arith.constant 0.000000e+00 : f32
    %138 = vector.broadcast %cst_125 : f32 to vector<3x16xf32>
    %139 = arith.maximumf %137, %138 : vector<3x16xf32>
    %c4_126 = arith.constant 4 : index
    %c0_127 = arith.constant 0 : index
    %140 = tpu.strided_load %arg6[%c4_126, %c0_127] {strides = array<i32: 4, 1>} : memref<144x16xf32, #tpu.memory_space<vmem>>, vector<3x16xf32>
    tpu.strided_store %arg6[%c4_126, %c0_127], %139 {strides = array<i32: 4, 1>} : memref<144x16xf32, #tpu.memory_space<vmem>>, vector<3x16xf32>
    %c1_128 = arith.constant 1 : index
    %c0_129 = arith.constant 0 : index
    %141 = vector.load %arg6[%c1_128, %c0_129] : memref<144x16xf32, #tpu.memory_space<vmem>>, vector<13x16xf32>
    %c4_130 = arith.constant 4 : index
    %c0_131 = arith.constant 0 : index
    %142 = vector.load %arg3[%c4_130, %c0_131] : memref<6x16xf32, #tpu.memory_space<vmem>>, vector<1x8xf32>
    %c119 = arith.constant 119 : index
    %c0_132 = arith.constant 0 : index
    %143 = vector.load %arg2[%c119, %c0_132] : memref<208x16xf32, #tpu.memory_space<vmem>>, vector<16x8xf32>
    %cst_133 = arith.constant dense<0.000000e+00> : vector<13x8xf32>
    %144 = tpu.matmul %141, %143, %cst_133 {dimension_numbers = #tpu.dot_dimension_numbers<[1], [0], [0], [1], [0, 0, 1, 1], [], []>, precision = #tpu.contract_precision<fp32>} : vector<13x16xf32>, vector<16x8xf32>, vector<13x8xf32> -> vector<13x8xf32>
    %c135 = arith.constant 135 : index
    %c0_134 = arith.constant 0 : index
    %145 = vector.load %arg2[%c135, %c0_134] : memref<208x16xf32, #tpu.memory_space<vmem>>, vector<16x8xf32>
    %cst_135 = arith.constant dense<0.000000e+00> : vector<13x8xf32>
    %146 = tpu.matmul %141, %145, %cst_135 {dimension_numbers = #tpu.dot_dimension_numbers<[1], [0], [0], [1], [0, 0, 1, 1], [], []>, precision = #tpu.contract_precision<fp32>} : vector<13x16xf32>, vector<16x8xf32>, vector<13x8xf32> -> vector<13x8xf32>
    %c151 = arith.constant 151 : index
    %c0_136 = arith.constant 0 : index
    %147 = vector.load %arg2[%c151, %c0_136] : memref<208x16xf32, #tpu.memory_space<vmem>>, vector<16x8xf32>
    %cst_137 = arith.constant dense<0.000000e+00> : vector<13x8xf32>
    %148 = tpu.matmul %141, %147, %cst_137 {dimension_numbers = #tpu.dot_dimension_numbers<[1], [0], [0], [1], [0, 0, 1, 1], [], []>, precision = #tpu.contract_precision<fp32>} : vector<13x16xf32>, vector<16x8xf32>, vector<13x8xf32> -> vector<13x8xf32>
    %c167 = arith.constant 167 : index
    %c0_138 = arith.constant 0 : index
    %149 = vector.load %arg2[%c167, %c0_138] : memref<208x16xf32, #tpu.memory_space<vmem>>, vector<16x8xf32>
    %cst_139 = arith.constant dense<0.000000e+00> : vector<13x8xf32>
    %150 = tpu.matmul %141, %149, %cst_139 {dimension_numbers = #tpu.dot_dimension_numbers<[1], [0], [0], [1], [0, 0, 1, 1], [], []>, precision = #tpu.contract_precision<fp32>} : vector<13x16xf32>, vector<16x8xf32>, vector<13x8xf32> -> vector<13x8xf32>
    %c183 = arith.constant 183 : index
    %c0_140 = arith.constant 0 : index
    %151 = vector.load %arg2[%c183, %c0_140] : memref<208x16xf32, #tpu.memory_space<vmem>>, vector<16x8xf32>
    %cst_141 = arith.constant dense<0.000000e+00> : vector<13x8xf32>
    %152 = tpu.matmul %141, %151, %cst_141 {dimension_numbers = #tpu.dot_dimension_numbers<[1], [0], [0], [1], [0, 0, 1, 1], [], []>, precision = #tpu.contract_precision<fp32>} : vector<13x16xf32>, vector<16x8xf32>, vector<13x8xf32> -> vector<13x8xf32>
    %cst_142 = arith.constant 0.000000e+00 : f32
    %153 = vector.broadcast %cst_142 : f32 to vector<1x8xf32>
    %154 = tpu.concatenate %144, %153 in 0 : vector<13x8xf32>, vector<1x8xf32> -> vector<14x8xf32>
    %cst_143 = arith.constant 0.000000e+00 : f32
    %155 = vector.broadcast %cst_143 : f32 to vector<1x8xf32>
    %156 = tpu.concatenate %155, %152 in 0 : vector<1x8xf32>, vector<13x8xf32> -> vector<14x8xf32>
    %157 = arith.addf %154, %156 : vector<14x8xf32>
    %158 = vector.broadcast %142 : vector<1x8xf32> to vector<14x8xf32>
    %159 = arith.addf %157, %158 : vector<14x8xf32>
    %cst_144 = arith.constant 0.000000e+00 : f32
    %160 = vector.broadcast %cst_144 : f32 to vector<14x8xf32>
    %161 = arith.maximumf %159, %160 : vector<14x8xf32>
    %c1_145 = arith.constant 1 : index
    %c0_146 = arith.constant 0 : index
    %162 = tpu.strided_load %arg5[%c1_145, %c0_146] {strides = array<i32: 4, 1>} : memref<144x16xf32, #tpu.memory_space<vmem>>, vector<14x8xf32>
    tpu.strided_store %arg5[%c1_145, %c0_146], %161 {strides = array<i32: 4, 1>} : memref<144x16xf32, #tpu.memory_space<vmem>>, vector<14x8xf32>
    %163 = vector.broadcast %142 : vector<1x8xf32> to vector<13x8xf32>
    %164 = arith.addf %146, %163 : vector<13x8xf32>
    %cst_147 = arith.constant 0.000000e+00 : f32
    %165 = vector.broadcast %cst_147 : f32 to vector<13x8xf32>
    %166 = arith.maximumf %164, %165 : vector<13x8xf32>
    %c2_148 = arith.constant 2 : index
    %c0_149 = arith.constant 0 : index
    %167 = tpu.strided_load %arg5[%c2_148, %c0_149] {strides = array<i32: 4, 1>} : memref<144x16xf32, #tpu.memory_space<vmem>>, vector<13x8xf32>
    tpu.strided_store %arg5[%c2_148, %c0_149], %166 {strides = array<i32: 4, 1>} : memref<144x16xf32, #tpu.memory_space<vmem>>, vector<13x8xf32>
    %168 = vector.broadcast %142 : vector<1x8xf32> to vector<13x8xf32>
    %169 = arith.addf %148, %168 : vector<13x8xf32>
    %cst_150 = arith.constant 0.000000e+00 : f32
    %170 = vector.broadcast %cst_150 : f32 to vector<13x8xf32>
    %171 = arith.maximumf %169, %170 : vector<13x8xf32>
    %c3_151 = arith.constant 3 : index
    %c0_152 = arith.constant 0 : index
    %172 = tpu.strided_load %arg5[%c3_151, %c0_152] {strides = array<i32: 4, 1>} : memref<144x16xf32, #tpu.memory_space<vmem>>, vector<13x8xf32>
    tpu.strided_store %arg5[%c3_151, %c0_152], %171 {strides = array<i32: 4, 1>} : memref<144x16xf32, #tpu.memory_space<vmem>>, vector<13x8xf32>
    %173 = vector.broadcast %142 : vector<1x8xf32> to vector<13x8xf32>
    %174 = arith.addf %150, %173 : vector<13x8xf32>
    %cst_153 = arith.constant 0.000000e+00 : f32
    %175 = vector.broadcast %cst_153 : f32 to vector<13x8xf32>
    %176 = arith.maximumf %174, %175 : vector<13x8xf32>
    %c4_154 = arith.constant 4 : index
    %c0_155 = arith.constant 0 : index
    %177 = tpu.strided_load %arg5[%c4_154, %c0_155] {strides = array<i32: 4, 1>} : memref<144x16xf32, #tpu.memory_space<vmem>>, vector<13x8xf32>
    tpu.strided_store %arg5[%c4_154, %c0_155], %176 {strides = array<i32: 4, 1>} : memref<144x16xf32, #tpu.memory_space<vmem>>, vector<13x8xf32>
    %c1_156 = arith.constant 1 : index
    %c0_157 = arith.constant 0 : index
    %178 = vector.load %arg5[%c1_156, %c0_157] : memref<144x16xf32, #tpu.memory_space<vmem>>, vector<53x8xf32>
    %c5_158 = arith.constant 5 : index
    %c0_159 = arith.constant 0 : index
    %179 = vector.load %arg3[%c5_158, %c0_159] : memref<6x16xf32, #tpu.memory_space<vmem>>, vector<1x1xf32>
    %c199 = arith.constant 199 : index
    %c0_160 = arith.constant 0 : index
    %180 = vector.load %arg2[%c199, %c0_160] : memref<208x16xf32, #tpu.memory_space<vmem>>, vector<1x8xf32>
    %181 = vector.broadcast %180 : vector<1x8xf32> to vector<53x8xf32>
    %182 = arith.mulf %178, %181 : vector<53x8xf32>
    %cst_161 = arith.constant dense<0.000000e+00> : vector<53xf32>
    %183 = vector.multi_reduction <add>, %182, %cst_161 [1] : vector<53x8xf32> to vector<53xf32>
    %184 = vector.shape_cast %183 : vector<53xf32> to vector<53x1xf32>
    %c200 = arith.constant 200 : index
    %c0_162 = arith.constant 0 : index
    %185 = vector.load %arg2[%c200, %c0_162] : memref<208x16xf32, #tpu.memory_space<vmem>>, vector<1x8xf32>
    %186 = vector.broadcast %185 : vector<1x8xf32> to vector<53x8xf32>
    %187 = arith.mulf %178, %186 : vector<53x8xf32>
    %cst_163 = arith.constant dense<0.000000e+00> : vector<53xf32>
    %188 = vector.multi_reduction <add>, %187, %cst_163 [1] : vector<53x8xf32> to vector<53xf32>
    %189 = vector.shape_cast %188 : vector<53xf32> to vector<53x1xf32>
    %c201 = arith.constant 201 : index
    %c0_164 = arith.constant 0 : index
    %190 = vector.load %arg2[%c201, %c0_164] : memref<208x16xf32, #tpu.memory_space<vmem>>, vector<1x8xf32>
    %191 = vector.broadcast %190 : vector<1x8xf32> to vector<53x8xf32>
    %192 = arith.mulf %178, %191 : vector<53x8xf32>
    %cst_165 = arith.constant dense<0.000000e+00> : vector<53xf32>
    %193 = vector.multi_reduction <add>, %192, %cst_165 [1] : vector<53x8xf32> to vector<53xf32>
    %194 = vector.shape_cast %193 : vector<53xf32> to vector<53x1xf32>
    %cst_166 = arith.constant 0.000000e+00 : f32
    %195 = vector.broadcast %cst_166 : f32 to vector<1x1xf32>
    %196 = tpu.concatenate %184, %195 in 0 : vector<53x1xf32>, vector<1x1xf32> -> vector<54x1xf32>
    %cst_167 = arith.constant 0.000000e+00 : f32
    %197 = vector.broadcast %cst_167 : f32 to vector<1x1xf32>
    %198 = tpu.concatenate %197, %194 in 0 : vector<1x1xf32>, vector<53x1xf32> -> vector<54x1xf32>
    %199 = arith.addf %196, %198 : vector<54x1xf32>
    %200 = vector.broadcast %179 : vector<1x1xf32> to vector<54x1xf32>
    %201 = arith.addf %199, %200 : vector<54x1xf32>
    %c0_168 = arith.constant 0 : index
    %c0_169 = arith.constant 0 : index
    %c0_170 = arith.constant 0 : index
    %202 = tpu.strided_load %arg4[%c0_168, %c0_169, %c0_170] {strides = array<i32: 1, 2, 1>} : memref<1x108x1xf32, #tpu.memory_space<vmem>>, vector<1x54x1xf32>
    %203 = vector.shape_cast %202 : vector<1x54x1xf32> to vector<54x1xf32>
    %204 = vector.shape_cast %201 : vector<54x1xf32> to vector<1x54x1xf32>
    tpu.strided_store %arg4[%c0_168, %c0_169, %c0_170], %204 {strides = array<i32: 1, 2, 1>} : memref<1x108x1xf32, #tpu.memory_space<vmem>>, vector<1x54x1xf32>
    %cst_171 = arith.constant 0.000000e+00 : f32
    %205 = vector.broadcast %cst_171 : f32 to vector<1x1xf32>
    %206 = tpu.concatenate %189, %205 in 0 : vector<53x1xf32>, vector<1x1xf32> -> vector<54x1xf32>
    %207 = vector.broadcast %179 : vector<1x1xf32> to vector<54x1xf32>
    %208 = arith.addf %206, %207 : vector<54x1xf32>
    %c0_172 = arith.constant 0 : index
    %c1_173 = arith.constant 1 : index
    %c0_174 = arith.constant 0 : index
    %209 = tpu.strided_load %arg4[%c0_172, %c1_173, %c0_174] {strides = array<i32: 1, 2, 1>} : memref<1x108x1xf32, #tpu.memory_space<vmem>>, vector<1x54x1xf32>
    %210 = vector.shape_cast %209 : vector<1x54x1xf32> to vector<54x1xf32>
    %211 = vector.shape_cast %208 : vector<54x1xf32> to vector<1x54x1xf32>
    tpu.strided_store %arg4[%c0_172, %c1_173, %c0_174], %211 {strides = array<i32: 1, 2, 1>} : memref<1x108x1xf32, #tpu.memory_space<vmem>>, vector<1x54x1xf32>
    return
  }
  func.func @transform_0(%arg0: i32) -> (i32, i32, i32) {
    %c0_i32 = arith.constant 0 : i32
    %c0_i32_0 = arith.constant 0 : i32
    %c0_i32_1 = arith.constant 0 : i32
    return %arg0, %c0_i32, %c0_i32_0 : i32, i32, i32
  }
  func.func @transform_1(%arg0: i32) -> (i32, i32) {
    %c0_i32 = arith.constant 0 : i32
    %c0_i32_0 = arith.constant 0 : i32
    %c0_i32_1 = arith.constant 0 : i32
    return %c0_i32, %c0_i32_0 : i32, i32
  }
  func.func @transform_2(%arg0: i32) -> (i32, i32) {
    %c0_i32 = arith.constant 0 : i32
    %c0_i32_0 = arith.constant 0 : i32
    %c0_i32_1 = arith.constant 0 : i32
    return %c0_i32, %c0_i32_0 : i32, i32
  }
  func.func @transform_3(%arg0: i32) -> (i32, i32, i32) {
    %c0_i32 = arith.constant 0 : i32
    %c0_i32_0 = arith.constant 0 : i32
    %c0_i32_1 = arith.constant 0 : i32
    return %arg0, %c0_i32, %c0_i32_0 : i32, i32, i32
  }
}

</mosaic_0001>

<bundles_post_ra>
// kernel: cnn_ae_forward.1
= control target key start
LH: loop header
LB: loop body
LE: loop exit
PB: predicated region body
PF: predicated region fallthrough
CT: control target
= control target key end

     0   :  { %s11170_s12 = smov 0   ;;  %s11922_s0 = inlined_call_operand.vmem [shape: f32[2,128,1], index: 0, kind: input, shape index: {}]   ;;  %s11923_s1 = inlined_call_operand.vmem [shape: f32[208,16], index: 1, kind: input, shape index: {}]   ;;  %s11924_s2 = inlined_call_operand.vmem [shape: f32[6,16], index: 2, kind: input, shape index: {}]   ;;  %s11925_s3 = inlined_call_operand.vmem [shape: f32[2,108,1], index: 3, kind: output, shape index: {}]  }
   0x1 LB: > { %s9684_s13 = sadd.s32 4294967295, %s11145_s12   ;;  %p9688_p0 = scmp.ge.s32.totalorder %s11145_s12, 1  ;;  %s11145_s12 = sphi %s11170_s12, %s13_s12  }
   0x2   : > { %p137_p1 = scmp.lt.s32.totalorder %s11145_s12, 3 }
   0x4   : > { %p138_p2 = pnand %p9688_p0, %p137_p1 }
   0x5   : > { %p161_p3 = scmp.lt.s32.totalorder (!%p138_p2), %s9684_s13, 1  ;;  %vm171_vm0 = vcmask (!%p138_p2), 0   ;;  %v11147_v0 = vmov (!%p138_p2), 0   ;;  %v11148_v1 = vmov (!%p138_p2), 0.0   ;;  %vm189_vm1 = vcmask (!%p138_p2), 7168   ;;  %v646_v58 = vld [vmem:[%s11923_s1 + $0x15] sm:$0xff] (!%p138_p2) }
   0x6   : > { %141 = sbr.rel (%p138_p2) target bundleno = 2011 (0x7db), region = 32  ;;  %11138 = vset.pattern.permute.xlu1 (!%p138_p2), %v11147_v0  ;;  %11137 = vset.pattern.permute.xlu0 (!%p138_p2), %v11147_v0  ;;  %172 = vst.msk [vmem:[#allocation2] sm:$0x1] (!%p138_p2), %vm171_vm0, %v11148_v1  ;;  %vm629_vm2 = vcmask (!%p138_p2), 122880   ;;  %v647_v59 = vld [vmem:[%s11923_s1 + $0x1d] sm:$0xff] (!%p138_p2)  ;;  %v655_v60 = vand.u32 (!%p138_p2), 4294901760, %v646_v58 }
   0x7   : > { %10268 = vmatprep.subr.mxu1 (!%p138_p2), %v11148_v1  ;;  %v658_v61 = vand.u32 (!%p138_p2), 4294901760, %v647_v59  ;;  %vm603_vm3 = vcmask (!%p138_p2), 130048   ;;  %vm611_vm4 = vcmask (!%p138_p2), 129024   ;;  %vm3221_vm5 = vcmask (!%p138_p2), 57344  }
   0x8   : > { %v743_v63 = vsub.f32 (!%p138_p2), %v646_v58, %v655_v60  ;;  %vm11149_vm6 = vmmov (!%p138_p2), 0   ;;  %vm3217_vm7 = vcmask (!%p138_p2), 63488   ;;  %vm3215_vm8 = vcmask (!%p138_p2), 64512  }
   0x9   : > { %v11230_v62 = vpack.c.bf16 (!%p138_p2), %v658_v61, %v655_v60  ;;  %v750_v0 = vsub.f32 (!%p138_p2), %v647_v59, %v658_v61  ;;  %10270 = vmatprep.mubr.msk.f32.mxu1 (!%p138_p2), %vm11149_vm6, %v11148_v1  ;;  %vm4591_vm9 = vcmask (!%p138_p2), 8192   ;;  %vm4603_vm10 = vcmask (!%p138_p2), 1041408  }
   0xa   : > { %vm4587_vm11 = vcmask (!%p138_p2), 14336   ;;  %vm4594_vm12 = vcmask (!%p138_p2), 10240   ;;  %vm4599_vm13 = vcmask (!%p138_p2), 15360   ;;  %vm5506_vm14 = vcmask (!%p138_p2), 1042432  }
   0xb   : > { %10719 = vmatprep.subr.bf16.mxu0 (!%p138_p2), %v11230_v62  ;;  %vm5511_vm15 = vcmask (!%p138_p2), 1040384   ;;  %vm7899_vm0 = vcmask (!%p138_p2), 1044480  }
   0xc   : > { %10721 = vmatpush3.bf16.msra.mxu0 (!%p138_p2), %v11230_v62 }
   0xd   : > { %s11927_s13 = smov (!%p161_p3, %s9684_s13), 1 }
   0xe   : > { %s9721_s14 = sshll.u32 %s11927_s13, 7  ;;  %s11125_s25 = smul.u32 112, %s11927_s13 }
   0xf   : > { %s11186_s17 = scalar_lea.vmem %s11922_s0, %s9721_s14 }
  0x10   : > { %v176_v2 = vld [vmem:[%s11186_s17 + $0x18] sm:$0xff]  ;;  %v177_v3 = vld [vmem:[%s11186_s17 + $0x20] sm:$0xff]  ;;  %v178_v4 = vld [vmem:[%s11186_s17 + $0x28] sm:$0xff]  ;;  %s11883_s30 = scalar_lea.vmem %s11925_s3, %s11125_s25 }
  0x11   : > { %193 = vst.msk [vmem:[#allocation2 + $0x19] sm:$0xff] %vm189_vm1, %v176_v2  ;;  %194 = vst.msk [vmem:[#allocation2 + $0x21] sm:$0xff] %vm189_vm1, %v177_v3  ;;  %v173_v5 = vld [vmem:[%s11186_s17] sm:$0xff]  ;;  %v174_v6 = vld [vmem:[%s11186_s17 + $0x8] sm:$0xff]  ;;  %v744_v2 = vand.u32 4294901760, %v743_v63  ;;  %v751_v3 = vand.u32 4294901760, %v750_v0 }
  0x12   : > { %195 = vst.msk [vmem:[#allocation2 + $0x29] sm:$0xff] %vm189_vm1, %v178_v4  ;;  %v179_v7 = vld [vmem:[%s11186_s17 + $0x30] sm:$0xff]  ;;  %190 = vst.msk [vmem:[#allocation2 + $0x1] sm:$0xff] %vm189_vm1, %v173_v5  ;;  %v180_v8 = vld [vmem:[%s11186_s17 + $0x38] sm:$0xff] }
  0x13   : > { %191 = vst.msk [vmem:[#allocation2 + $0x9] sm:$0xff] %vm189_vm1, %v174_v6  ;;  %196 = vst.msk [vmem:[#allocation2 + $0x31] sm:$0xff] %vm189_vm1, %v179_v7  ;;  %v175_v9 = vld [vmem:[%s11186_s17 + $0x10] sm:$0xff]  ;;  %v182_v10 = vld [vmem:[%s11186_s17 + $0x48] sm:$0xff]  ;;  %v745_v4 = vsub.f32 %v743_v63, %v744_v2  ;;  %v752_v5 = vsub.f32 %v750_v0, %v751_v3 }
  0x14   : > { %197 = vst.msk [vmem:[#allocation2 + $0x39] sm:$0xff] %vm189_vm1, %v180_v8  ;;  %192 = vst.msk [vmem:[#allocation2 + $0x11] sm:$0xff] %vm189_vm1, %v175_v9  ;;  %v183_v11 = vld [vmem:[%s11186_s17 + $0x50] sm:$0xff]  ;;  %v184_v12 = vld [vmem:[%s11186_s17 + $0x58] sm:$0xff]  ;;  %v11234_v8 = vpack.c.bf16 %v750_v0, %v743_v63 }
  0x15   : > { %199 = vst.msk [vmem:[#allocation2 + $0x49] sm:$0xff] %vm189_vm1, %v182_v10  ;;  %v181_v13 = vld [vmem:[%s11186_s17 + $0x40] sm:$0xff]  ;;  %200 = vst.msk [vmem:[#allocation2 + $0x51] sm:$0xff] %vm189_vm1, %v183_v11  ;;  %v186_v14 = vld [vmem:[%s11186_s17 + $0x68] sm:$0xff]  ;;  %v746_v6 = vand.u32 4294901760, %v745_v4  ;;  %v753_v7 = vand.u32 4294901760, %v752_v5 }
  0x16   : > { %201 = vst.msk [vmem:[#allocation2 + $0x59] sm:$0xff] %vm189_vm1, %v184_v12  ;;  %198 = vst.msk [vmem:[#allocation2 + $0x41] sm:$0xff] %vm189_vm1, %v181_v13  ;;  %v187_v15 = vld [vmem:[%s11186_s17 + $0x70] sm:$0xff]  ;;  %v188_v16 = vld [vmem:[%s11186_s17 + $0x78] sm:$0xff]  ;;  %v11239_v13 = vpack.c.bf16 %v751_v3, %v744_v2 }
  0x17   : > { %203 = vst.msk [vmem:[#allocation2 + $0x69] sm:$0xff] %vm189_vm1, %v186_v14  ;;  %204 = vst.msk [vmem:[#allocation2 + $0x71] sm:$0xff] %vm189_vm1, %v187_v15  ;;  %v185_v17 = vld [vmem:[%s11186_s17 + $0x60] sm:$0xff]  ;;  %v11236_v9 = vpack.c.bf16 %v753_v7, %v746_v6 }
  0x18   : > { %205 = vst.msk [vmem:[#allocation2 + $0x79] sm:$0xff] %vm189_vm1, %v188_v16  ;;  %202 = vst.msk [vmem:[#allocation2 + $0x61] sm:$0xff] %vm189_vm1, %v185_v17  ;;  %v11268_v5 = vld [vmem:[%s11923_s1 + $0x4] ss:$0 sm:$0xff]  ;;  %vm9477_vm1 = vcmask 61440  }
  0x19   : > { %v210_v18 = vld [vmem:[#allocation2 + $0x20] ss:$2 sm:$0xff]  ;;  %v279_v25 = vld [vmem:[#allocation2 + $0x21] ss:$2 sm:$0xff]  ;;  %10723 = vmatprep.subr.bf16.mxu0 %v11236_v9 }
  0x1a   : > { %234 = vperm.xlu1 %11138, %v210_v18   ;;  %v206_v19 = vld [vmem:[#allocation2] ss:$2 sm:$0xff]  ;;  %v275_v23 = vld [vmem:[#allocation2 + $0x1] ss:$2 sm:$0xff] }
  0x1b   : > { %224 = vperm.xlu0 %11137, %v206_v19   ;;  %v212_v20 = vld [vmem:[#allocation2 + $0x30] ss:$2 sm:$0xff]  ;;  %630 = vst.msk [vmem:[#allocation2] sm:$0x1] %vm629_vm2, %v11148_v1  ;;  %v277_v22 = vld [vmem:[#allocation2 + $0x11] ss:$2 sm:$0xff] }
  0x1c   : > { %v208_v21 = vld [vmem:[#allocation2 + $0x10] ss:$2 sm:$0xff]  ;;  %v281_v24 = vld [vmem:[#allocation2 + $0x31] ss:$2 sm:$0xff] }
  0x1d   : > { %v354_v26 = vld [vmem:[#allocation2 + $0x12] ss:$2 sm:$0xff]  ;;  %v285_v32 = vld [vmem:[#allocation2 + $0x51] ss:$2 sm:$0xff]  ;;  %v283_v33 = vld [vmem:[#allocation2 + $0x41] ss:$2 sm:$0xff] }
  0x1e   : > { %239 = vperm.xlu1 %11138, %v212_v20   ;;  %v508_v27 = vld [vmem:[#allocation2 + $0x14] ss:$2 sm:$0xff]  ;;  %v431_v43 = vld [vmem:[#allocation2 + $0x13] ss:$2 sm:$0xff]  ;;  %v429_v44 = vld [vmem:[#allocation2 + $0x3] ss:$2 sm:$0xff] }
  0x1f   : > { %229 = vperm.xlu0 %11137, %v208_v21   ;;  %639 = vst.msk [vmem:[#allocation2 + $0x20] sm:$0x1] %vm629_vm2, %v11148_v1  ;;  %v216_v28 = vld [vmem:[#allocation2 + $0x50] ss:$2 sm:$0xff]  ;;  %v214_v29 = vld [vmem:[#allocation2 + $0x40] ss:$2 sm:$0xff] }
  0x20   : > { %v220_v30 = vld [vmem:[#allocation2 + $0x70] ss:$2 sm:$0x7f]  ;;  %v218_v31 = vld [vmem:[#allocation2 + $0x60] ss:$2 sm:$0xff] }
  0x21   : > { %v289_v34 = vld [vmem:[#allocation2 + $0x71] ss:$2 sm:$0x7f]  ;;  %v287_v35 = vld [vmem:[#allocation2 + $0x61] ss:$2 sm:$0xff] }
  0x22   : > { %298 = vperm.xlu1 %11138, %v277_v22   ;;  %v352_v36 = vld [vmem:[#allocation2 + $0x2] ss:$2 sm:$0xff]  ;;  %v358_v37 = vld [vmem:[#allocation2 + $0x32] ss:$2 sm:$0xff]  ;;  %v435_v45 = vld [vmem:[#allocation2 + $0x33] ss:$2 sm:$0xff] }
  0x23   : > { %293 = vperm.xlu0 %11137, %v275_v23   ;;  %v356_v38 = vld [vmem:[#allocation2 + $0x22] ss:$2 sm:$0xff]  ;;  %v362_v39 = vld [vmem:[#allocation2 + $0x52] ss:$2 sm:$0xff]  ;;  %v433_v46 = vld [vmem:[#allocation2 + $0x23] ss:$2 sm:$0xff] }
  0x24   : > { %v360_v40 = vld [vmem:[#allocation2 + $0x42] ss:$2 sm:$0xff]  ;;  %v366_v41 = vld [vmem:[#allocation2 + $0x72] ss:$2 sm:$0x7f] }
  0x25   : > { %v364_v42 = vld [vmem:[#allocation2 + $0x62] ss:$2 sm:$0xff]  ;;  %v439_v47 = vld [vmem:[#allocation2 + $0x53] ss:$2 sm:$0xff]  ;;  %v437_v48 = vld [vmem:[#allocation2 + $0x43] ss:$2 sm:$0xff] }
  0x26   : > { %308 = vperm.xlu1 %11138, %v281_v24   ;;  %v443_v49 = vld [vmem:[#allocation2 + $0x73] ss:$2 sm:$0x7f]  ;;  %v441_v50 = vld [vmem:[#allocation2 + $0x63] ss:$2 sm:$0xff] }
  0x27   : > { %303 = vperm.xlu0 %11137, %v279_v25   ;;  %v506_v51 = vld [vmem:[#allocation2 + $0x4] ss:$2 sm:$0xff]  ;;  %v512_v52 = vld [vmem:[#allocation2 + $0x34] ss:$2 sm:$0xff] }
  0x28   : > { %v510_v53 = vld [vmem:[#allocation2 + $0x24] ss:$2 sm:$0xff]  ;;  %v516_v54 = vld [vmem:[#allocation2 + $0x54] ss:$2 sm:$0xff] }
  0x29   : > { %v514_v55 = vld [vmem:[#allocation2 + $0x44] ss:$2 sm:$0xff]  ;;  %v520_v56 = vld [vmem:[#allocation2 + $0x74] ss:$2 sm:$0x7f] }
  0x2a   : > { %249 = vperm.xlu1 %11138, %v216_v28   ;;  %v518_v57 = vld [vmem:[#allocation2 + $0x64] ss:$2 sm:$0xff] }
  0x2b   : > { %244 = vperm.xlu0 %11137, %v214_v29  }
  0x2e   : > { %259 = vperm.xlu1 %11138, %v220_v30  }
  0x2f   : > { %254 = vperm.xlu0 %11137, %v218_v31  }
  0x32   : > { %318 = vperm.xlu1 %11138, %v285_v32  }
  0x33   : > { %313 = vperm.xlu0 %11137, %v283_v33  }
  0x36   : > { %328 = vperm.xlu1 %11138, %v289_v34  }
  0x37   : > { %323 = vperm.xlu0 %11137, %v287_v35  }
  0x3a   : > { %375 = vperm.xlu1 %11138, %v354_v26  }
  0x3b   : > { %370 = vperm.xlu0 %11137, %v352_v36  }
  0x3e   : > { %385 = vperm.xlu1 %11138, %v358_v37  }
  0x3f   : > { %380 = vperm.xlu0 %11137, %v356_v38   ;;  %v9693_v38 = vld [vmem:[%s11923_s1 + $0x1] ss:$0 sm:$0xff] }
  0x42   : > { %395 = vperm.xlu1 %11138, %v362_v39  }
  0x43   : > { %390 = vperm.xlu0 %11137, %v360_v40   ;;  %v9692_v40 = vld [vmem:[%s11923_s1] ss:$0 sm:$0xff] }
  0x46   : > { %405 = vperm.xlu1 %11138, %v366_v41  }
  0x47   : > { %400 = vperm.xlu0 %11137, %v364_v42  }
  0x4a   : > { %452 = vperm.xlu1 %11138, %v431_v43   ;;  %v11254_v43 = vld [vmem:[%s11923_s1 + $0x2] ss:$0 sm:$0xff] }
  0x4b   : > { %447 = vperm.xlu0 %11137, %v429_v44  }
  0x4e   : > { %462 = vperm.xlu1 %11138, %v435_v45  }
  0x4f   : > { %457 = vperm.xlu0 %11137, %v433_v46  }
  0x52   : > { %472 = vperm.xlu1 %11138, %v439_v47  }
  0x53   : > { %467 = vperm.xlu0 %11137, %v437_v48  }
  0x56   : > { %482 = vperm.xlu1 %11138, %v443_v49  }
  0x57   : > { %477 = vperm.xlu0 %11137, %v441_v50   ;;  %v11259_v50 = vld [vmem:[%s11923_s1 + $0x3] ss:$0 sm:$0xff] }
  0x5a   : > { %529 = vperm.xlu1 %11138, %v508_v27  }
  0x5b   : > { %524 = vperm.xlu0 %11137, %v506_v51  }
  0x5e   : > { %539 = vperm.xlu1 %11138, %v512_v52  }
  0x5f   : > { %534 = vperm.xlu0 %11137, %v510_v53  }
  0x62   : > { %549 = vperm.xlu1 %11138, %v516_v54  }
  0x63   : > { %544 = vperm.xlu0 %11137, %v514_v55  }
  0x66   : > { %559 = vperm.xlu1 %11138, %v520_v56  }
  0x67   : > { %554 = vperm.xlu0 %11137, %v518_v57  }
  0x99   : > { %v235_v10 = vpop.permute.xlu1 %234 }
  0x9a   : > { %v225_v11 = vpop.permute.xlu0 %224  ;;  %v268_v51 = vmul.f32 %v9692_v40, %v235_v10 }
  0x9b   : > { %v266_v48 = vmul.f32 %v9692_v40, %v225_v11 }
  0x9d   : > { %v240_v12 = vpop.permute.xlu1 %239 }
  0x9e   : > { %v230_v14 = vpop.permute.xlu0 %229  ;;  %v269_v52 = vmul.f32 %v9692_v40, %v240_v12 }
  0x9f   : > { %v267_v49 = vmul.f32 %v9692_v40, %v230_v14 }
  0xa1   : > { %v299_v15 = vpop.permute.xlu1 %298 }
  0xa2   : > { %v294_v16 = vpop.permute.xlu0 %293  ;;  %v336_v41 = vmul.f32 %v9693_v38, %v299_v15 }
  0xa3   : > { %v335_v42 = vmul.f32 %v9693_v38, %v294_v16 }
  0xa4   : > { %v344_v54 = vadd.f32 %v336_v41, %v267_v49 }
  0xa5   : > { %v309_v17 = vpop.permute.xlu1 %308  ;;  %v343_v55 = vadd.f32 %v335_v42, %v266_v48 }
  0xa6   : > { %v304_v18 = vpop.permute.xlu0 %303  ;;  %v338_v45 = vmul.f32 %v9693_v38, %v309_v17 }
  0xa7   : > { %v337_v46 = vmul.f32 %v9693_v38, %v304_v18 }
  0xa8   : > { %v346_v58 = vadd.f32 %v338_v45, %v269_v52 }
  0xa9   : > { %v250_v19 = vpop.permute.xlu1 %249  ;;  %v345_v59 = vadd.f32 %v337_v46, %v268_v51 }
  0xaa   : > { %v245_v20 = vpop.permute.xlu0 %244  ;;  %v271_v0 = vmul.f32 %v9692_v40, %v250_v19 }
  0xab   : > { %v270_v2 = vmul.f32 %v9692_v40, %v245_v20 }
  0xad   : > { %v260_v21 = vpop.permute.xlu1 %259 }
  0xae   : > { %v255_v22 = vpop.permute.xlu0 %254  ;;  %v273_v6 = vmul.f32 %v9692_v40, %v260_v21 }
  0xaf   : > { %v272_v12 = vmul.f32 %v9692_v40, %v255_v22  ;;  %v11278_v22 = vld [vmem:[%s11924_s2] ss:$0 sm:$0xff] }
  0xb1   : > { %v319_v23 = vpop.permute.xlu1 %318 }
  0xb2   : > { %v314_v24 = vpop.permute.xlu0 %313  ;;  %v340_v60 = vmul.f32 %v9693_v38, %v319_v23 }
  0xb3   : > { %v339_v3 = vmul.f32 %v9693_v38, %v314_v24 }
  0xb4   : > { %v348_v18 = vadd.f32 %v340_v60, %v271_v0 }
  0xb5   : > { %v329_v25 = vpop.permute.xlu1 %328 }
  0xb6   : > { %v324_v26 = vpop.permute.xlu0 %323  ;;  %v342_v7 = vmul.f32 %v9693_v38, %v329_v25 }
  0xb7   : > { %v341_v14 = vmul.f32 %v9693_v38, %v324_v26 }
  0xb8   : > { %v350_v26 = vadd.f32 %v342_v7, %v273_v6 }
  0xb9   : > { %v376_v27 = vpop.permute.xlu1 %375 }
  0xba   : > { %v371_v28 = vpop.permute.xlu0 %370  ;;  %v413_v53 = vmul.f32 %v11254_v43, %v376_v27  ;;  %v347_v27 = vadd.f32 %v339_v3, %v270_v2 }
  0xbb   : > { %v412_v56 = vmul.f32 %v11254_v43, %v371_v28 }
  0xbc   : > { %v421_v10 = vadd.f32 %v413_v53, %v344_v54 }
  0xbd   : > { %v386_v29 = vpop.permute.xlu1 %385  ;;  %v420_v15 = vadd.f32 %v412_v56, %v343_v55 }
  0xbe   : > { %v381_v30 = vpop.permute.xlu0 %380  ;;  %v415_v11 = vmul.f32 %v11254_v43, %v386_v29 }
  0xbf   : > { %v414_v16 = vmul.f32 %v11254_v43, %v381_v30 }
  0xc0   : > { %v423_v29 = vadd.f32 %v415_v11, %v346_v58 }
  0xc1   : > { %v396_v31 = vpop.permute.xlu1 %395 }
  0xc2   : > { %v391_v32 = vpop.permute.xlu0 %390  ;;  %v417_v30 = vmul.f32 %v11254_v43, %v396_v31 }
  0xc3   : > { %v416_v38 = vmul.f32 %v11254_v43, %v391_v32 }
  0xc4   : > { %v425_v53 = vadd.f32 %v417_v30, %v348_v18 }
  0xc5   : > { %v11241_v33 = vpop.permute.xlu1 %405  ;;  %v424_v56 = vadd.f32 %v416_v38, %v347_v27 }
  0xc6   : > { %v11243_v34 = vpop.permute.xlu0 %400  ;;  %v419_v32 = vmul.f32 %v11254_v43, %v11241_v33 }
  0xc8   : > { %v427_v6 = vadd.f32 %v419_v32, %v350_v26 }
  0xc9   : > { %v453_v35 = vpop.permute.xlu1 %452 }
  0xca   : > { %v448_v36 = vpop.permute.xlu0 %447  ;;  %v490_v61 = vmul.f32 %v11259_v50, %v453_v35 }
  0xcb   : > { %v489_v4 = vmul.f32 %v11259_v50, %v448_v36  ;;  %v349_v36 = vadd.f32 %v341_v14, %v272_v12 }
  0xcc   : > { %v498_v19 = vadd.f32 %v490_v61, %v421_v10 }
  0xcd   : > { %v463_v37 = vpop.permute.xlu1 %462  ;;  %v497_v28 = vadd.f32 %v489_v4, %v420_v15 }
  0xce   : > { %v458_v39 = vpop.permute.xlu0 %457  ;;  %v492_v20 = vmul.f32 %v11259_v50, %v463_v37  ;;  %v422_v37 = vadd.f32 %v414_v16, %v345_v59 }
  0xcf   : > { %v491_v21 = vmul.f32 %v11259_v50, %v458_v39 }
  0xd0   : > { %v500_v42 = vadd.f32 %v492_v20, %v423_v29 }
  0xd1   : > { %v473_v44 = vpop.permute.xlu1 %472  ;;  %v499_v49 = vadd.f32 %v491_v21, %v422_v37 }
  0xd2   : > { %v468_v47 = vpop.permute.xlu0 %467  ;;  %v494_v39 = vmul.f32 %v11259_v50, %v473_v44  ;;  %v418_v44 = vmul.f32 %v11254_v43, %v11243_v34 }
  0xd3   : > { %v493_v51 = vmul.f32 %v11259_v50, %v468_v47 }
  0xd4   : > { %v502_v61 = vadd.f32 %v494_v39, %v425_v53 }
  0xd5   : > { %v483_v57 = vpop.permute.xlu1 %482  ;;  %v501_v33 = vadd.f32 %v493_v51, %v424_v56 }
  0xd6   : > { %v478_v63 = vpop.permute.xlu0 %477  ;;  %v496_v47 = vmul.f32 %v11259_v50, %v483_v57  ;;  %v426_v57 = vadd.f32 %v418_v44, %v349_v36 }
  0xd7   : > { %v495_v4 = vmul.f32 %v11259_v50, %v478_v63 }
  0xd8   : > { %v504_v15 = vadd.f32 %v496_v47, %v427_v6  ;;  %v642_v47 = vld [vmem:[%s11923_s1 + $0x5] sm:$0xff] }
  0xd9   : > { %v530_v17 = vpop.permute.xlu1 %529 }
  0xda   : > { %v567_v23 = vmul.f32 %v11268_v5, %v530_v17  ;;  %v525_v24 = vpop.permute.xlu0 %524  ;;  %v503_v17 = vadd.f32 %v495_v4, %v426_v57 }
  0xdb   : > { %v566_v25 = vmul.f32 %v11268_v5, %v525_v24 }
  0xdc   : > { %v575_v35 = vadd.f32 %v567_v23, %v498_v19 }
  0xdd   : > { %v574_v40 = vadd.f32 %v566_v25, %v497_v28  ;;  %v540_v41 = vpop.permute.xlu1 %539 }
  0xde   : > { %v588_v45 = vadd.f32 %v11278_v22, %v575_v35  ;;  %v569_v46 = vmul.f32 %v11268_v5, %v540_v41  ;;  %v535_v48 = vpop.permute.xlu0 %534 }
  0xdf   : > { %v587_v31 = vadd.f32 %v11278_v22, %v574_v40  ;;  %v568_v52 = vmul.f32 %v11268_v5, %v535_v48 }
  0xe0   : > { %v596_v54 = vmax.f32 %v588_v45, 0.0  ;;  %v577_v55 = vadd.f32 %v569_v46, %v500_v42 }
  0xe1   : > { %v595_v58 = vmax.f32 %v587_v31, 0.0  ;;  %v576_v59 = vadd.f32 %v568_v52, %v499_v49  ;;  %v550_v60 = vpop.permute.xlu1 %549 }
  0xe2   : > { %605 = vst.msk [vmem:[#allocation3 + $0x9] sm:$0xff] %vm603_vm3, %v596_v54  ;;  %v590_v0 = vadd.f32 %v11278_v22, %v577_v55  ;;  %v571_v2 = vmul.f32 %v11268_v5, %v550_v60  ;;  %v545_v3 = vpop.permute.xlu0 %544 }
  0xe3   : > { %604 = vst.msk [vmem:[#allocation3 + $0x1] sm:$0xff] %vm603_vm3, %v595_v58  ;;  %v589_v34 = vadd.f32 %v11278_v22, %v576_v59  ;;  %v570_v43 = vmul.f32 %v11268_v5, %v545_v3 }
  0xe4   : > { %v598_v7 = vmax.f32 %v590_v0, 0.0  ;;  %v579_v10 = vadd.f32 %v571_v2, %v502_v61  ;;  %v643_v0 = vld [vmem:[%s11923_s1 + $0xd] sm:$0xff] }
  0xe5   : > { %v597_v11 = vmax.f32 %v589_v34, 0.0  ;;  %v578_v12 = vadd.f32 %v570_v43, %v501_v33  ;;  %v560_v14 = vpop.permute.xlu1 %559  ;;  %v1166_v2 = vand.u32 4294901760, %v643_v0 }
  0xe6   : > { %607 = vst.msk [vmem:[#allocation3 + $0x19] sm:$0xff] %vm603_vm3, %v598_v7  ;;  %v592_v16 = vadd.f32 %v11278_v22, %v579_v10  ;;  %v573_v50 = vmul.f32 %v11268_v5, %v560_v14  ;;  %v555_v63 = vpop.permute.xlu0 %554 }
  0xe7   : > { %606 = vst.msk [vmem:[#allocation3 + $0x11] sm:$0xff] %vm603_vm3, %v597_v11  ;;  %v591_v18 = vadd.f32 %v11278_v22, %v578_v12  ;;  %v572_v19 = vmul.f32 %v11268_v5, %v555_v63  ;;  %v1258_v33 = vsub.f32 %v643_v0, %v1166_v2 }
  0xe8   : > { %v600_v20 = vmax.f32 %v592_v16, 0.0  ;;  %v581_v23 = vadd.f32 %v573_v50, %v504_v15 }
  0xe9   : > { %v599_v24 = vmax.f32 %v591_v18, 0.0  ;;  %v580_v27 = vadd.f32 %v572_v19, %v503_v17  ;;  %v1259_v6 = vand.u32 4294901760, %v1258_v33 }
  0xea   : > { %v614_v28 = vld [vmem:[#allocation3 + $0x1] ss:$2 sm:$0xff]  ;;  %v622_v21 = vld [vmem:[#allocation3 + $0x2] ss:$2 sm:$0xff]  ;;  %609 = vst.msk [vmem:[#allocation3 + $0x29] sm:$0xff] %vm603_vm3, %v600_v20  ;;  %v594_v25 = vadd.f32 %v11278_v22, %v581_v23 }
  0xeb   : > { %v631_v26 = vmax.f32 %v614_v28, %v622_v21  ;;  %608 = vst.msk [vmem:[#allocation3 + $0x21] sm:$0xff] %vm603_vm3, %v599_v24  ;;  %v593_v29 = vadd.f32 %v11278_v22, %v580_v27  ;;  %v1260_v12 = vsub.f32 %v1258_v33, %v1259_v6  ;;  %v1666_v27 = vld [vmem:[%s11923_s1 + $0x25] sm:$0xff]  ;;  %v1667_v28 = vld [vmem:[%s11923_s1 + $0x2d] sm:$0xff] }
  0xec   : > { %v602_v30 = vmax.f32 %v594_v25, 0.0  ;;  %v1675_v21 = vand.u32 4294901760, %v1666_v27  ;;  %v1678_v25 = vand.u32 4294901760, %v1667_v28 }
  0xed   : > { %635 = vst.msk [vmem:[#allocation2 + $0x1] sm:$0xff] %vm603_vm3, %v631_v26  ;;  %v601_v5 = vmax.f32 %v593_v29, 0.0  ;;  %v1261_v16 = vand.u32 4294901760, %v1260_v12 }
  0xee   : > { %v616_v35 = vld [vmem:[#allocation3 + $0x11] ss:$2 sm:$0xff]  ;;  %v624_v36 = vld [vmem:[#allocation3 + $0x12] ss:$2 sm:$0xff]  ;;  %612 = vst.msk [vmem:[#allocation3 + $0x39] sm:$0x7f] %vm611_vm4, %v602_v30  ;;  %v1763_v29 = vsub.f32 %v1666_v27, %v1675_v21  ;;  %v1770_v30 = vsub.f32 %v1667_v28, %v1678_v25 }
  0xef   : > { %v632_v37 = vmax.f32 %v616_v35, %v624_v36  ;;  %610 = vst.msk [vmem:[#allocation3 + $0x31] sm:$0xff] %vm603_vm3, %v601_v5 }
  0xf0   : > { %v1764_v36 = vand.u32 4294901760, %v1763_v29 }
  0xf1   : > { %636 = vst.msk [vmem:[#allocation2 + $0x9] sm:$0xff] %vm603_vm3, %v632_v37  ;;  %v1771_v37 = vand.u32 4294901760, %v1770_v30 }
  0xf2   : > { %v618_v38 = vld [vmem:[#allocation3 + $0x21] ss:$2 sm:$0xff]  ;;  %v626_v40 = vld [vmem:[#allocation3 + $0x22] ss:$2 sm:$0xff] }
  0xf3   : > { %v633_v41 = vmax.f32 %v618_v38, %v626_v40 }
  0xf5   : > { %637 = vst.msk [vmem:[#allocation2 + $0x11] sm:$0xff] %vm603_vm3, %v633_v41  ;;  %v10766_v41 = vpack.c.bf16 %v1678_v25, %v1675_v21 }
  0xf6   : > { %v620_v22 = vld [vmem:[#allocation3 + $0x31] ss:$2 sm:$0x7f]  ;;  %v628_v42 = vld [vmem:[#allocation3 + $0x32] ss:$2 sm:$0x7f] }
  0xf7   : > { %v634_v39 = vmax.f32 %v620_v22, %v628_v42  ;;  %v1765_v22 = vsub.f32 %v1763_v29, %v1764_v36  ;;  %v1772_v42 = vsub.f32 %v1770_v30, %v1771_v37 }
  0xf8   : > { %v644_v45 = vld [vmem:[#allocation2 + $0x1] ss:$2 sm:$0xff]  ;;  %v640_v46 = vld [vmem:[#allocation2] ss:$2 sm:$0xff] }
  0xf9   : > { %638 = vst.msk [vmem:[#allocation2 + $0x19] sm:$0x7f] %vm611_vm4, %v634_v39  ;;  %v649_v48 = vsel %vm603_vm3, %v644_v45, 0  ;;  %v11319_v31 = vld [vmem:[#allocation2 + $0x2] ss:$2 sm:$0xff] }
  0xfa   : > { %3222 = vst.msk [vmem:[#allocation2] sm:$0x1] %vm3221_vm5, %v11148_v1  ;;  %v721_v49 = vand.u32 4294901760, %v649_v48  ;;  %v1669_v26 = vsel %vm603_vm3, %v11319_v31, 0 }
  0xfb   : > { %v11358_v5 = vand.u32 4294901760, %v1669_v26 }
  0xfc   : > { %v722_v51 = vsub.f32 %v649_v48, %v721_v49  ;;  %v11321_v52 = vld [vmem:[#allocation2 + $0x4] ss:$2 sm:$0xff]  ;;  %v1773_v48 = vand.u32 4294901760, %v1772_v42 }
  0xfd   : > { %3225 = vst.msk [vmem:[#allocation2 + $0x8] sm:$0x1] %vm3221_vm5, %v11148_v1  ;;  %v1742_v38 = vsub.f32 %v1669_v26, %v11358_v5  ;;  %v2697_v28 = vsel %vm603_vm3, %v11321_v52, 0 }
  0xfe   : > { %v723_v53 = vand.u32 4294901760, %v722_v51  ;;  %v2769_v26 = vand.u32 4294901760, %v2697_v28 }
  0xff   : > { %v1743_v45 = vand.u32 4294901760, %v1742_v38 }
 0x100   : > { %v724_v32 = vsub.f32 %v722_v51, %v723_v53  ;;  %v645_v54 = vld [vmem:[#allocation2 + $0x11] ss:$2 sm:$0x7f]  ;;  %v641_v34 = vld [vmem:[#allocation2 + $0x10] ss:$2 sm:$0x7f] }
 0x101   : > { %v652_v55 = vsel %vm603_vm3, %v645_v54, 0  ;;  %v1160_v10 = vsel %vm603_vm3, %v641_v34, 0  ;;  %v1665_v35 = vld [vmem:[#allocation2 + $0x12] ss:$2 sm:$0x7f] }
 0x102   : > { %v725_v56 = vand.u32 4294901760, %v724_v32  ;;  %v731_v44 = vand.u32 4294901760, %v652_v55  ;;  %v11344_v14 = vand.u32 4294901760, %v1160_v10  ;;  %v1672_v40 = vsel %vm603_vm3, %v1665_v35, 0 }
 0x103   : > { %v11363_v39 = vand.u32 4294901760, %v1672_v40  ;;  %v2770_v35 = vsub.f32 %v2697_v28, %v2769_v26 }
 0x104   : > { %10062 = vmatprep.mubr.f32.mxu0 %v725_v56  ;;  %v732_v58 = vsub.f32 %v652_v55, %v731_v44  ;;  %v1240_v50 = vsub.f32 %v1160_v10, %v11344_v14  ;;  %v10774_v56 = vpack.c.bf16 %v1770_v30, %v1763_v29  ;;  %v2693_v29 = vld [vmem:[#allocation2 + $0x14] ss:$2 sm:$0x7f] }
 0x106   : > { %v733_v59 = vand.u32 4294901760, %v732_v58  ;;  %v1241_v18 = vand.u32 4294901760, %v1240_v50 }
 0x108   : > { %v734_v60 = vsub.f32 %v732_v58, %v733_v59  ;;  %v1242_v20 = vsub.f32 %v1240_v50, %v1241_v18 }
 0x10a   : > { %v735_v61 = vand.u32 4294901760, %v734_v60  ;;  %v1243_v23 = vand.u32 4294901760, %v1242_v20  ;;  %v2178_v60 = vld [vmem:[#allocation2 + $0x3] ss:$2 sm:$0xff] }
 0x10b   : > { %v2183_v0 = vsel %vm603_vm3, %v2178_v60, 0 }
 0x10c   : > { %10063 = vmatmul.mubr.f32.vlgmr.msra.gmra.mrb[0].mxu0 %v735_v61 }
 0x10d   : > { %10725 = vmatpush3.bf16.msra.mxu0 %v11236_v9  ;;  %10069 = vmatprep.mubr.f32.mxu0 %v721_v49  ;;  %v1163_v9 = vand.u32 4294901760, %v642_v47 }
 0x10e   : > { %10727 = vmatprep.subr.bf16.mxu0 %v11234_v8 }
 0x10f   : > { %v1251_v3 = vsub.f32 %v642_v47, %v1163_v9  ;;  %v10742_v57 = vpack.c.bf16 %v1166_v2, %v1163_v9 }
 0x111   : > { %v1252_v43 = vand.u32 4294901760, %v1251_v3  ;;  %v10750_v24 = vpack.c.bf16 %v1258_v33, %v1251_v3 }
 0x113   : > { %v1253_v11 = vsub.f32 %v1251_v3, %v1252_v43  ;;  %v2179_v3 = vld [vmem:[#allocation2 + $0x13] ss:$2 sm:$0x7f] }
 0x114   : > { %10070 = vmatmul.mubr.f32.vlgmr.msra.gmra.mrb[0].mxu0 %v731_v44 }
 0x115   : > { %10729 = vmatpush3.bf16.msra.mxu0 %v11234_v8  ;;  %10076 = vmatprep.mubr.f32.mxu0 %v722_v51  ;;  %v1157_v8 = vsel %vm603_vm3, %v640_v46, 0  ;;  %v1766_v46 = vand.u32 4294901760, %v1765_v22  ;;  %v1744_v51 = vsub.f32 %v1742_v38, %v1743_v45  ;;  %v2771_v22 = vand.u32 4294901760, %v2770_v35 }
 0x116   : > { %10731 = vmatprep.subr.bf16.mxu0 %v11230_v62  ;;  %v11338_v4 = vand.u32 4294901760, %v1157_v8 }
 0x117   : > { %v10770_v31 = vpack.c.bf16 %v1773_v48, %v1766_v46  ;;  %v1745_v32 = vand.u32 4294901760, %v1744_v51 }
 0x118   : > { %v1230_v7 = vsub.f32 %v1157_v8, %v11338_v4  ;;  %v11378_v8 = vand.u32 4294901760, %v2183_v0 }
 0x11a   : > { %v1231_v15 = vand.u32 4294901760, %v1230_v7  ;;  %v2256_v34 = vsub.f32 %v2183_v0, %v11378_v8 }
 0x11c   : > { %10077 = vmatmul.mubr.f32.vlgmr.msra.gmra.mrb[0].mxu0 %v732_v58  ;;  %v1232_v63 = vsub.f32 %v1230_v7, %v1231_v15  ;;  %v2180_v58 = vld [vmem:[%s11923_s1 + $0x35] sm:$0xff] }
 0x11d   : > { %10733 = vmatpush3.bf16.msra.mxu0 %v11230_v62  ;;  %10083 = vmatprep.mubr.f32.mxu0 %v723_v53  ;;  %v2189_v61 = vand.u32 4294901760, %v2180_v58 }
 0x11e   : > { %10735 = vmatprep.subr.bf16.mxu0 %v11239_v13  ;;  %v1233_v19 = vand.u32 4294901760, %v1232_v63 }
 0x11f   : > { %v2277_v9 = vsub.f32 %v2180_v58, %v2189_v61 }
 0x121   : > { %v2278_v33 = vand.u32 4294901760, %v2277_v9 }
 0x124   : > { %10084 = vmatmul.mubr.f32.vlgmr.msra.gmra.mrb[0].mxu0 %v733_v59  ;;  %v2181_v59 = vld [vmem:[%s11923_s1 + $0x3d] sm:$0xff] }
 0x125   : > { %10737 = vmatpush3.bf16.msra.mxu0 %v11239_v13  ;;  %10090 = vmatprep.mubr.f32.mxu0 %v721_v49  ;;  %v1254_v13 = vand.u32 4294901760, %v1253_v11  ;;  %v2192_v47 = vand.u32 4294901760, %v2181_v59  ;;  %v2257_v11 = vand.u32 4294901760, %v2256_v34 }
 0x126   : > { %10739 = vmatprep.subr.bf16.mxu0 %v11230_v62 }
 0x127   : > { %v10746_v17 = vpack.c.bf16 %v1261_v16, %v1254_v13  ;;  %v2284_v2 = vsub.f32 %v2181_v59, %v2192_v47  ;;  %v2258_v13 = vsub.f32 %v2256_v34, %v2257_v11 }
 0x129   : > { %v2259_v63 = vand.u32 4294901760, %v2258_v13 }
 0x12c   : > { %10091 = vmatmul.mubr.f32.vlgmr.msra.gmra.mrb[0].mxu0 %v731_v44 }
 0x12d   : > { %10741 = vmatpush3.bf16.msra.mxu0 %v11230_v62  ;;  %10097 = vmatprep.mubr.f32.mxu0 %v721_v49  ;;  %v10758_v62 = vpack.c.bf16 %v1259_v6, %v1252_v43  ;;  %v1752_v49 = vsub.f32 %v1672_v40, %v11363_v39  ;;  %v2186_v43 = vsel %vm603_vm3, %v2179_v3, 0  ;;  %v10790_v6 = vpack.c.bf16 %v2192_v47, %v2189_v61 }
 0x12e   : > { %10743 = vmatprep.subr.bf16.mxu0 %v10742_v57 }
 0x12f   : > { %v1753_v53 = vand.u32 4294901760, %v1752_v49 }
 0x131   : > { %v1754_v54 = vsub.f32 %v1752_v49, %v1753_v53 }
 0x133   : > { %v1755_v55 = vand.u32 4294901760, %v1754_v54  ;;  %v3229_v54 = vld [vmem:[%s11923_s1 + $0x5d] sm:$0xff] }
 0x134   : > { %10098 = vmatmul.mubr.f32.vlgmr.msra.gmra.mrb[0].mxu0 %v731_v44  ;;  %v10782_v44 = vpack.c.bf16 %v1771_v37, %v1764_v36  ;;  %v2700_v36 = vsel %vm603_vm3, %v2693_v29, 0 }
 0x135   : > { %10745 = vmatpush3.bf16.msra.mxu0 %v10742_v57  ;;  %10104 = vmatprep.mubr.f32.mxu0 %v1233_v19  ;;  %v10798_v19 = vpack.c.bf16 %v2284_v2, %v2277_v9 }
 0x136   : > { %10747 = vmatprep.subr.bf16.mxu0 %v10746_v17 }
 0x13c   : > { %10105 = vmatmul.mubr.f32.vlgmr.msra.gmra.mrb[0].mxu0 %v1243_v23  ;;  %v2694_v23 = vld [vmem:[%s11923_s1 + $0x45] sm:$0xff] }
 0x13d   : > { %10749 = vmatpush3.bf16.msra.mxu0 %v10746_v17  ;;  %10111 = vmatprep.mubr.f32.mxu0 %v11338_v4 }
 0x13e   : > { %10751 = vmatprep.subr.bf16.mxu0 %v10750_v24 }
 0x144   : > { %10112 = vmatmul.mubr.f32.vlgmr.msra.gmra.mrb[0].mxu0 %v11344_v14 }
 0x145   : > { %10753 = vmatpush3.bf16.msra.mxu0 %v10750_v24  ;;  %10118 = vmatprep.mubr.f32.mxu0 %v1230_v7  ;;  %v2279_v7 = vsub.f32 %v2277_v9, %v2278_v33  ;;  %v2695_v24 = vld [vmem:[%s11923_s1 + $0x4d] sm:$0xff] }
 0x146   : > { %10755 = vmatprep.subr.bf16.mxu0 %v10742_v57  ;;  %v2706_v27 = vand.u32 4294901760, %v2695_v24 }
 0x147   : > { %v2280_v12 = vand.u32 4294901760, %v2279_v7 }
 0x148   : > { %v2798_v25 = vsub.f32 %v2695_v24, %v2706_v27 }
 0x14c   : > { %10119 = vmatmul.mubr.f32.vlgmr.msra.gmra.mrb[0].mxu0 %v1240_v50 }
 0x14d   : > { %10757 = vmatpush3.bf16.msra.mxu0 %v10742_v57  ;;  %10125 = vmatprep.mubr.f32.mxu0 %v1231_v15 }
 0x14e   : > { %10759 = vmatprep.subr.bf16.mxu0 %v10758_v62 }
 0x154   : > { %10126 = vmatmul.mubr.f32.vlgmr.msra.gmra.mrb[0].mxu0 %v1241_v18 }
 0x155   : > { %10761 = vmatpush3.bf16.msra.mxu0 %v10758_v62  ;;  %10132 = vmatprep.mubr.f32.mxu0 %v11338_v4  ;;  %v2703_v62 = vand.u32 4294901760, %v2694_v23 }
 0x156   : > { %10763 = vmatprep.subr.bf16.mxu0 %v10742_v57 }
 0x157   : > { %v2791_v21 = vsub.f32 %v2694_v23, %v2703_v62  ;;  %v10814_v37 = vpack.c.bf16 %v2706_v27, %v2703_v62  ;;  %v4129_v27 = vld [vmem:[%s11923_s1 + $0x65] sm:$0xff] }
 0x159   : > { %v2792_v30 = vand.u32 4294901760, %v2791_v21 }
 0x15c   : > { %10133 = vmatmul.mubr.f32.vlgmr.msra.gmra.mrb[0].mxu0 %v11344_v14 }
 0x15d   : > { %10765 = vmatpush3.bf16.msra.mxu0 %v10742_v57  ;;  %10139 = vmatprep.mubr.f32.mxu0 %v11338_v4  ;;  %v2285_v4 = vand.u32 4294901760, %v2284_v2  ;;  %v11383_v57 = vand.u32 4294901760, %v2186_v43 }
 0x15e   : > { %10767 = vmatprep.subr.bf16.mxu0 %v10766_v41 }
 0x15f   : > { %v2286_v10 = vsub.f32 %v2284_v2, %v2285_v4  ;;  %v2266_v15 = vsub.f32 %v2186_v43, %v11383_v57  ;;  %v10806_v20 = vpack.c.bf16 %v2285_v4, %v2278_v33 }
 0x161   : > { %v2267_v50 = vand.u32 4294901760, %v2266_v15 }
 0x163   : > { %v2268_v17 = vsub.f32 %v2266_v15, %v2267_v50 }
 0x164   : > { %10140 = vmatmul.mubr.f32.vlgmr.msra.gmra.mrb[0].mxu0 %v11344_v14  ;;  %v2287_v14 = vand.u32 4294901760, %v2286_v10 }
 0x165   : > { %10769 = vmatpush3.bf16.msra.mxu0 %v10766_v41  ;;  %10146 = vmatprep.mubr.f32.mxu0 %v1745_v32  ;;  %v2269_v18 = vand.u32 4294901760, %v2268_v17 }
 0x166   : > { %10771 = vmatprep.subr.bf16.mxu0 %v10770_v31  ;;  %v10794_v16 = vpack.c.bf16 %v2287_v14, %v2280_v12  ;;  %v3227_v14 = vld [vmem:[%s11923_s1 + $0x55] sm:$0xff] }
 0x167   : > { %v3683_v13 = vand.u32 4294901760, %v3227_v14 }
 0x16c   : > { %10147 = vmatmul.mubr.f32.vlgmr.msra.gmra.mrb[0].mxu0 %v1755_v55  ;;  %v3234_v55 = vand.u32 4294901760, %v3229_v54 }
 0x16d   : > { %10773 = vmatpush3.bf16.msra.mxu0 %v10770_v31  ;;  %10153 = vmatprep.mubr.f32.mxu0 %v11358_v5 }
 0x16e   : > { %10775 = vmatprep.subr.bf16.mxu0 %v10774_v56  ;;  %10269 = vmatpush3.msra.mxu1 %v3234_v55 }
 0x16f   : > { %10273 = vmatprep.subr.mxu1 %v11148_v1 }
 0x174   : > { %10154 = vmatmul.mubr.f32.vlgmr.msra.gmra.mrb[0].mxu0 %v11363_v39 }
 0x175   : > { %10777 = vmatpush3.bf16.msra.mxu0 %v10774_v56  ;;  %10160 = vmatprep.mubr.f32.mxu0 %v1742_v38  ;;  %v2793_v38 = vsub.f32 %v2791_v21, %v2792_v30  ;;  %v9698_v56 = vld [vmem:[%s11924_s2 + $0x1] ss:$0 sm:$0xff] }
 0x176   : > { %10779 = vmatprep.subr.bf16.mxu0 %v10766_v41 }
 0x177   : > { %v2794_v52 = vand.u32 4294901760, %v2793_v38 }
 0x17c   : > { %10161 = vmatmul.mubr.f32.vlgmr.msra.gmra.mrb[0].mxu0 %v1752_v49 }
 0x17d   : > { %10781 = vmatpush3.bf16.msra.mxu0 %v10766_v41  ;;  %10167 = vmatprep.mubr.f32.mxu0 %v1743_v45  ;;  %v2772_v45 = vsub.f32 %v2770_v35, %v2771_v22 }
 0x17e   : > { %10783 = vmatprep.subr.bf16.mxu0 %v10782_v44 }
 0x17f   : > { %v2773_v49 = vand.u32 4294901760, %v2772_v45 }
 0x184   : > { %10168 = vmatmul.mubr.f32.vlgmr.msra.gmra.mrb[0].mxu0 %v1753_v53  ;;  %v10822_v53 = vpack.c.bf16 %v2798_v25, %v2791_v21  ;;  %v4134_v21 = vand.u32 4294901760, %v4129_v27 }
 0x185   : > { %10785 = vmatpush3.bf16.msra.mxu0 %v10782_v44  ;;  %10174 = vmatprep.mubr.f32.mxu0 %v11358_v5 }
 0x186   : > { %10787 = vmatprep.subr.bf16.mxu0 %v10766_v41 }
 0x18c   : > { %10175 = vmatmul.mubr.f32.vlgmr.msra.gmra.mrb[0].mxu0 %v11363_v39 }
 0x18d   : > { %10789 = vmatpush3.bf16.msra.mxu0 %v10766_v41  ;;  %10181 = vmatprep.mubr.f32.mxu0 %v11358_v5  ;;  %v2799_v5 = vand.u32 4294901760, %v2798_v25  ;;  %v2779_v41 = vand.u32 4294901760, %v2700_v36 }
 0x18e   : > { %10791 = vmatprep.subr.bf16.mxu0 %v10790_v6 }
 0x18f   : > { %v2800_v40 = vsub.f32 %v2798_v25, %v2799_v5  ;;  %v10830_v32 = vpack.c.bf16 %v2799_v5, %v2792_v30 }
 0x191   : > { %v2801_v42 = vand.u32 4294901760, %v2800_v40  ;;  %v4598_v40 = vld [vmem:[%s11923_s1 + $0x6d] sm:$0x3] }
 0x193   : > { %v10818_v46 = vpack.c.bf16 %v2801_v42, %v2794_v52 }
 0x194   : > { %10182 = vmatmul.mubr.f32.vlgmr.msra.gmra.mrb[0].mxu0 %v11363_v39  ;;  %v2780_v39 = vsub.f32 %v2700_v36, %v2779_v41 }
 0x195   : > { %10793 = vmatpush3.bf16.msra.mxu0 %v10790_v6  ;;  %10188 = vmatprep.mubr.f32.mxu0 %v2259_v63 }
 0x196   : > { %10795 = vmatprep.subr.bf16.mxu0 %v10794_v16  ;;  %v2781_v48 = vand.u32 4294901760, %v2780_v39 }
 0x198   : > { %v2782_v51 = vsub.f32 %v2780_v39, %v2781_v48 }
 0x19a   : > { %v2783_v31 = vand.u32 4294901760, %v2782_v51 }
 0x19c   : > { %10189 = vmatmul.mubr.f32.vlgmr.msra.gmra.mrb[0].mxu0 %v2269_v18 }
 0x19d   : > { %10797 = vmatpush3.bf16.msra.mxu0 %v10794_v16  ;;  %10195 = vmatprep.mubr.f32.mxu0 %v11378_v8 }
 0x19e   : > { %10799 = vmatprep.subr.bf16.mxu0 %v10798_v19 }
 0x1a4   : > { %10196 = vmatmul.mubr.f32.vlgmr.msra.gmra.mrb[0].mxu0 %v11383_v57 }
 0x1a5   : > { %10801 = vmatpush3.bf16.msra.mxu0 %v10798_v19  ;;  %10202 = vmatprep.mubr.f32.mxu0 %v2256_v34 }
 0x1a6   : > { %10803 = vmatprep.subr.bf16.mxu0 %v10790_v6 }
 0x1ac   : > { %10203 = vmatmul.mubr.f32.vlgmr.msra.gmra.mrb[0].mxu0 %v2266_v15 }
 0x1ad   : > { %10805 = vmatpush3.bf16.msra.mxu0 %v10790_v6  ;;  %10209 = vmatprep.mubr.f32.mxu0 %v2257_v11 }
 0x1ae   : > { %10807 = vmatprep.subr.bf16.mxu0 %v10806_v20 }
 0x1b4   : > { %10210 = vmatmul.mubr.f32.vlgmr.msra.gmra.mrb[0].mxu0 %v2267_v50  ;;  %v3760_v50 = vsub.f32 %v3227_v14, %v3683_v13 }
 0x1b5   : > { %10809 = vmatpush3.bf16.msra.mxu0 %v10806_v20  ;;  %10216 = vmatprep.mubr.f32.mxu0 %v11378_v8 }
 0x1b6   : > { %10811 = vmatprep.subr.bf16.mxu0 %v10790_v6  ;;  %v3761_v17 = vand.u32 4294901760, %v3760_v50 }
 0x1b8   : > { %v3762_v19 = vsub.f32 %v3760_v50, %v3761_v17 }
 0x1ba   : > { %v3763_v23 = vand.u32 4294901760, %v3762_v19 }
 0x1bc   : > { %10217 = vmatmul.mubr.f32.vlgmr.msra.gmra.mrb[0].mxu0 %v11383_v57 }
 0x1bd   : > { %10813 = vmatpush3.bf16.msra.mxu0 %v10790_v6  ;;  %10223 = vmatprep.mubr.f32.mxu0 %v11378_v8  ;;  %v3311_v8 = vsub.f32 %v3229_v54, %v3234_v55 }
 0x1be   : > { %10815 = vmatprep.subr.bf16.mxu0 %v10814_v37 }
 0x1bf   : > { %v3312_v34 = vand.u32 4294901760, %v3311_v8 }
 0x1c1   : > { %v3313_v7 = vsub.f32 %v3311_v8, %v3312_v34 }
 0x1c3   : > { %v3314_v11 = vand.u32 4294901760, %v3313_v7 }
 0x1c4   : > { %10224 = vmatmul.mubr.f32.vlgmr.msra.gmra.mrb[0].mxu0 %v11383_v57 }
 0x1c5   : > { %10817 = vmatpush3.bf16.msra.mxu0 %v10814_v37  ;;  %10230 = vmatprep.mubr.f32.mxu0 %v2773_v49 }
 0x1c6   : > { %10819 = vmatprep.subr.bf16.mxu0 %v10818_v46 }
 0x1cc   : > { %10231 = vmatmul.mubr.f32.vlgmr.msra.gmra.mrb[0].mxu0 %v2783_v31 }
 0x1cd   : > { %10821 = vmatpush3.bf16.msra.mxu0 %v10818_v46  ;;  %10237 = vmatprep.mubr.f32.mxu0 %v2769_v26 }
 0x1ce   : > { %10823 = vmatprep.subr.bf16.mxu0 %v10822_v53 }
 0x1d4   : > { %10238 = vmatmul.mubr.f32.vlgmr.msra.gmra.mrb[0].mxu0 %v2779_v41 }
 0x1d5   : > { %10825 = vmatpush3.bf16.msra.mxu0 %v10822_v53  ;;  %10244 = vmatprep.mubr.f32.mxu0 %v2770_v35 }
 0x1d6   : > { %10827 = vmatprep.subr.bf16.mxu0 %v10814_v37 }
 0x1dc   : > { %10245 = vmatmul.mubr.f32.vlgmr.msra.gmra.mrb[0].mxu0 %v2780_v39 }
 0x1dd   : > { %10829 = vmatpush3.bf16.msra.mxu0 %v10814_v37  ;;  %10251 = vmatprep.mubr.f32.mxu0 %v2771_v22  ;;  %v11487_v22 = vsel %vm4603_vm10, %v4598_v40, 0 }
 0x1de   : > { %10831 = vmatprep.subr.bf16.mxu0 %v10830_v32  ;;  %v11493_v42 = vand.u32 4294901760, %v11487_v22 }
 0x1e4   : > { %10252 = vmatmul.mubr.f32.vlgmr.msra.gmra.mrb[0].mxu0 %v2781_v48 }
 0x1e5   : > { %10833 = vmatpush3.bf16.msra.mxu0 %v10830_v32  ;;  %10258 = vmatprep.mubr.f32.mxu0 %v2769_v26 }
 0x1e6   : > { %10835 = vmatprep.subr.bf16.mxu0 %v10814_v37 }
 0x1ec   : > { %10259 = vmatmul.mubr.f32.vlgmr.msra.gmra.mrb[0].mxu0 %v2779_v41 }
 0x1ed   : > { %10837 = vmatpush3.bf16.msra.mxu0 %v10814_v37  ;;  %10265 = vmatprep.mubr.f32.mxu0 %v2769_v26  ;;  %v4211_v26 = vsub.f32 %v4129_v27, %v4134_v21 }
 0x1ee   : > { %10448 = vmatprep.subr.mxu0 %v11148_v1 }
 0x1ef   : > { %v4212_v30 = vand.u32 4294901760, %v4211_v26 }
 0x1f1   : > { %v4213_v35 = vsub.f32 %v4211_v26, %v4212_v30 }
 0x1f3   : > { %v4214_v37 = vand.u32 4294901760, %v4213_v35 }
 0x1f4   : > { %10266 = vmatmul.mubr.f32.vlgmr.msra.gmra.mrb[0].mxu0 %v2779_v41  ;;  %v5054_v41 = vld [vmem:[%s11923_s1 + $0x71] sm:$0x3] }
 0x1f5   : > { %10450 = vmatprep.mubr.msk.f32.mxu0 %vm11149_vm6, %v11148_v1  ;;  %v11490_v52 = vsel %vm4603_vm10, %v5054_v41, 0 }
 0x1f6   : > { %v11496_v39 = vand.u32 4294901760, %v11490_v52 }
 0x1f8   : > { %10449 = vmatpush3.msra.mxu0 %v11496_v39 }
 0x1f9   : > { %10453 = vmatprep.subr.mxu0 %v11148_v1 }
 0x2c7   : > { %v10267_v44 = vpop.f32.mrb[0].mxu0 }
 0x2c8   : > { %v3212_v58 = vadd.f32 %v10267_v44, %v9698_v56  ;;  %v3194_v59 = vpop.f32.mrb[1].mxu0 }
 0x2c9   : > { %v3211_v60 = vadd.f32 %v9698_v56, %v3194_v59 }
 0x2ca   : > { %v3214_v61 = vmax.f32 %v3212_v58, 0.0 }
 0x2cb   : > { %v3213_v47 = vmax.f32 %v3211_v60, 0.0 }
 0x2cc   : > { %3218 = vst.msk [vmem:[#allocation3 + $0x9] sm:$0x7f] %vm3217_vm7, %v3214_v61 }
 0x2cd   : > { %3216 = vst.msk [vmem:[#allocation3 + $0x1] sm:$0xff] %vm3215_vm8, %v3213_v47 }
 0x2d4   : > { %v3219_v0 = vld [vmem:[#allocation3 + $0x1] ss:$2 sm:$0x7f]  ;;  %v3220_v9 = vld [vmem:[#allocation3 + $0x2] ss:$2 sm:$0x7f] }
 0x2d5   : > { %v3223_v2 = vmax.f32 %v3219_v0, %v3220_v9 }
 0x2d7   : > { %3224 = vst.msk [vmem:[#allocation2 + $0x1] sm:$0x7f] %vm3217_vm7, %v3223_v2 }
 0x2de   : > { %v3228_v3 = vld [vmem:[#allocation2 + $0x1] sm:$0x7f] }
 0x2df   : > { %v3226_v33 = vld [vmem:[#allocation2] sm:$0x7f]  ;;  %v3231_v4 = vsel %vm3215_vm8, %v3228_v3, 0 }
 0x2e0   : > { %4592 = vst.msk [vmem:[#allocation2] sm:$0x1] %vm4591_vm9, %v11148_v1  ;;  %v3299_v43 = vand.u32 4294901760, %v3231_v4  ;;  %v3680_v15 = vsel %vm3215_vm8, %v3226_v33, 0  ;;  %v4128_v62 = vld [vmem:[#allocation2 + $0x2] sm:$0x7f] }
 0x2e1   : > { %v3748_v16 = vand.u32 4294901760, %v3680_v15  ;;  %v4131_v28 = vsel %vm3215_vm8, %v4128_v62, 0 }
 0x2e2   : > { %v3300_v6 = vsub.f32 %v3231_v4, %v3299_v43  ;;  %v4199_v25 = vand.u32 4294901760, %v4131_v28 }
 0x2e3   : > { %v3749_v63 = vsub.f32 %v3680_v15, %v3748_v16 }
 0x2e4   : > { %v3301_v10 = vand.u32 4294901760, %v3300_v6  ;;  %v4200_v29 = vsub.f32 %v4131_v28, %v4199_v25 }
 0x2e5   : > { %v3750_v18 = vand.u32 4294901760, %v3749_v63 }
 0x2e6   : > { %v3302_v57 = vsub.f32 %v3300_v6, %v3301_v10  ;;  %v4201_v5 = vand.u32 4294901760, %v4200_v29 }
 0x2e7   : > { %v3751_v20 = vsub.f32 %v3749_v63, %v3750_v18 }
 0x2e8   : > { %v3303_v12 = vand.u32 4294901760, %v3302_v57  ;;  %v4202_v36 = vsub.f32 %v4200_v29, %v4201_v5 }
 0x2e9   : > { %v3752_v24 = vand.u32 4294901760, %v3751_v20 }
 0x2ea   : > { %10271 = vmatmul.mubr.f32.vlgmr.msra.gmra.mrb[0].mxu1 %v3303_v12  ;;  %v4203_v38 = vand.u32 4294901760, %v4202_v36 }
 0x2eb   : > { %10274 = vmatpush3.msra.mxu1 %v3314_v11  ;;  %10275 = vmatprep.mubr.msk.f32.mxu1 %vm11149_vm6, %v11148_v1 }
 0x2ec   : > { %10278 = vmatprep.subr.mxu1 %v11148_v1 }
 0x2ee   : > { %10276 = vmatmul.mubr.f32.vlgmr.msra.gmra.mrb[2].mxu1 %v3299_v43 }
 0x2ef   : > { %10279 = vmatpush3.msra.mxu1 %v3311_v8  ;;  %10280 = vmatprep.mubr.msk.f32.mxu1 %vm11149_vm6, %v11148_v1 }
 0x2f0   : > { %10283 = vmatprep.subr.mxu1 %v11148_v1 }
 0x2f2   : > { %10281 = vmatmul.mubr.f32.vlgmr.msra.gmra.mrb[4].mxu1 %v3300_v6 }
 0x2f3   : > { %10284 = vmatpush3.msra.mxu1 %v3234_v55  ;;  %10285 = vmatprep.mubr.msk.f32.mxu1 %vm11149_vm6, %v11148_v1 }
 0x2f4   : > { %10288 = vmatprep.subr.mxu1 %v11148_v1 }
 0x2f6   : > { %10286 = vmatmul.mubr.f32.vlgmr.msra.gmra.mrb[6].mxu1 %v3301_v10 }
 0x2f7   : > { %10289 = vmatpush3.msra.mxu1 %v3312_v34  ;;  %10290 = vmatprep.mubr.msk.f32.mxu1 %vm11149_vm6, %v11148_v1 }
 0x2f8   : > { %10293 = vmatprep.subr.mxu1 %v11148_v1 }
 0x2fa   : > { %10291 = vmatmul.mubr.f32.vlgmr.msra.gmra.mrb[8].mxu1 %v3299_v43 }
 0x2fb   : > { %10294 = vmatpush3.msra.mxu1 %v3234_v55  ;;  %10295 = vmatprep.mubr.msk.f32.mxu1 %vm11149_vm6, %v11148_v1 }
 0x2fc   : > { %10298 = vmatprep.subr.mxu1 %v11148_v1 }
 0x2fe   : > { %10296 = vmatmul.mubr.f32.vlgmr.msra.gmra.mrb[10].mxu1 %v3299_v43 }
 0x2ff   : > { %10299 = vmatpush3.msra.mxu1 %v3683_v13  ;;  %10300 = vmatprep.mubr.msk.f32.mxu1 %vm11149_vm6, %v11148_v1 }
 0x300   : > { %10303 = vmatprep.subr.mxu1 %v11148_v1 }
 0x302   : > { %10301 = vmatmul.mubr.f32.vlgmr.msra.gmra.mrb[12].mxu1 %v3752_v24 }
 0x303   : > { %10304 = vmatpush3.msra.mxu1 %v3763_v23  ;;  %10305 = vmatprep.mubr.msk.f32.mxu1 %vm11149_vm6, %v11148_v1 }
 0x304   : > { %10308 = vmatprep.subr.mxu1 %v11148_v1 }
 0x306   : > { %10306 = vmatmul.mubr.f32.vlgmr.msra.gmra.mrb[14].mxu1 %v3748_v16 }
 0x307   : > { %10309 = vmatpush3.msra.mxu1 %v3760_v50  ;;  %10310 = vmatprep.mubr.msk.f32.mxu1 %vm11149_vm6, %v11148_v1 }
 0x308   : > { %10313 = vmatprep.subr.mxu1 %v11148_v1 }
 0x30a   : > { %10311 = vmatmul.mubr.f32.vlgmr.msra.gmra.mrb[16].mxu1 %v3749_v63 }
 0x30b   : > { %10314 = vmatpush3.msra.mxu1 %v3683_v13  ;;  %10315 = vmatprep.mubr.msk.f32.mxu1 %vm11149_vm6, %v11148_v1 }
 0x30c   : > { %10318 = vmatprep.subr.mxu1 %v11148_v1 }
 0x30e   : > { %10316 = vmatmul.mubr.f32.vlgmr.msra.gmra.mrb[18].mxu1 %v3750_v18 }
 0x30f   : > { %10319 = vmatpush3.msra.mxu1 %v3761_v17  ;;  %10320 = vmatprep.mubr.msk.f32.mxu1 %vm11149_vm6, %v11148_v1 }
 0x310   : > { %10323 = vmatprep.subr.mxu1 %v11148_v1 }
 0x312   : > { %10321 = vmatmul.mubr.f32.vlgmr.msra.gmra.mrb[20].mxu1 %v3748_v16 }
 0x313   : > { %10324 = vmatpush3.msra.mxu1 %v3683_v13  ;;  %10325 = vmatprep.mubr.msk.f32.mxu1 %vm11149_vm6, %v11148_v1 }
 0x314   : > { %10328 = vmatprep.subr.mxu1 %v11148_v1 }
 0x316   : > { %10326 = vmatmul.mubr.f32.vlgmr.msra.gmra.mrb[22].mxu1 %v3748_v16 }
 0x317   : > { %10329 = vmatpush3.msra.mxu1 %v4134_v21  ;;  %10330 = vmatprep.mubr.msk.f32.mxu1 %vm11149_vm6, %v11148_v1 }
 0x318   : > { %10333 = vmatprep.subr.mxu1 %v11148_v1 }
 0x31a   : > { %10331 = vmatmul.mubr.f32.vlgmr.msra.gmra.mrb[24].mxu1 %v4203_v38 }
 0x31b   : > { %10334 = vmatpush3.msra.mxu1 %v4214_v37  ;;  %10335 = vmatprep.mubr.msk.f32.mxu1 %vm11149_vm6, %v11148_v1 }
 0x31c   : > { %10338 = vmatprep.subr.mxu1 %v11148_v1 }
 0x31e   : > { %10336 = vmatmul.mubr.f32.vlgmr.msra.gmra.mrb[26].mxu1 %v4199_v25 }
 0x31f   : > { %10339 = vmatpush3.msra.mxu1 %v4211_v26  ;;  %10340 = vmatprep.mubr.msk.f32.mxu1 %vm11149_vm6, %v11148_v1 }
 0x320   : > { %10343 = vmatprep.subr.mxu1 %v11148_v1 }
 0x322   : > { %10341 = vmatmul.mubr.f32.vlgmr.msra.gmra.mrb[28].mxu1 %v4200_v29 }
 0x323   : > { %10344 = vmatpush3.msra.mxu1 %v4134_v21  ;;  %10345 = vmatprep.mubr.msk.f32.mxu1 %vm11149_vm6, %v11148_v1 }
 0x324   : > { %10348 = vmatprep.subr.mxu1 %v11148_v1 }
 0x326   : > { %10346 = vmatmul.mubr.f32.vlgmr.msra.gmra.mrb[30].mxu1 %v4201_v5  ;;  %v9699_v5 = vld [vmem:[%s11924_s2 + $0x2] ss:$0 sm:$0xff] }
 0x327   : > { %10349 = vmatpush3.msra.mxu1 %v4212_v30  ;;  %10350 = vmatprep.mubr.msk.f32.mxu1 %vm11149_vm6, %v11148_v1 }
 0x328   : > { %10353 = vmatprep.subr.mxu1 %v11148_v1 }
 0x32a   : > { %10351 = vmatmul.mubr.f32.vlgmr.msra.gmra.mrb[32].mxu1 %v4199_v25 }
 0x32b   : > { %10354 = vmatpush3.msra.mxu1 %v4134_v21  ;;  %10355 = vmatprep.mubr.msk.f32.mxu1 %vm11149_vm6, %v11148_v1 }
 0x32c   : > { %10358 = vmatprep.subr.mxu1 %v11148_v1 }
 0x32e   : > { %10356 = vmatmul.mubr.f32.vlgmr.msra.gmra.mrb[34].mxu1 %v4199_v25 }
 0x32f   : > { %10360 = vmatprep.mubr.msk.f32.mxu1 %vm11149_vm6, %v11148_v1  ;;  %10359 = vmatpush3.msra.mxu1 %v11493_v42 }
 0x330   : > { %10363 = vmatprep.subr.mxu1 %v11148_v1 }
 0x3bd   : > { %v3305_v45 = vpop.f32.mrb[0].mxu1 }
 0x3be   : > { %v10272_v46 = vpop.f32.mrb[1].mxu1 }
 0x3bf   : > { %v6053_v46 = vsub.f32 %v11490_v52, %v11496_v39 }
 0x3c1   : > { %v3381_v48 = vpop.f32.mrb[2].mxu1 }
 0x3c2   : > { %v3382_v49 = vadd.f32 %v3381_v48, %v3305_v45  ;;  %v10277_v51 = vpop.f32.mrb[3].mxu1  ;;  %v4685_v45 = vsub.f32 %v11487_v22, %v11493_v42 }
 0x3c4   : > { %v4686_v51 = vand.u32 4294901760, %v4685_v45 }
 0x3c5   : > { %v3455_v31 = vpop.f32.mrb[4].mxu1 }
 0x3c6   : > { %v3456_v53 = vadd.f32 %v3455_v31, %v3382_v49  ;;  %v10282_v32 = vpop.f32.mrb[5].mxu1 }
 0x3c9   : > { %v3529_v54 = vpop.f32.mrb[6].mxu1 }
 0x3ca   : > { %v3530_v55 = vadd.f32 %v3529_v54, %v3456_v53  ;;  %v10287_v56 = vpop.f32.mrb[7].mxu1  ;;  %v6054_v53 = vand.u32 4294901760, %v6053_v46  ;;  %v4687_v54 = vsub.f32 %v4685_v45, %v4686_v51 }
 0x3cc   : > { %v6055_v56 = vsub.f32 %v6053_v46, %v6054_v53 }
 0x3cd   : > { %v3603_v44 = vpop.f32.mrb[8].mxu1 }
 0x3ce   : > { %v3604_v58 = vadd.f32 %v3603_v44, %v3530_v55  ;;  %v10292_v59 = vpop.f32.mrb[9].mxu1  ;;  %v4688_v44 = vand.u32 4294901760, %v4687_v54 }
 0x3cf   : > { %v5056_v59 = vld [vmem:[%s11923_s1 + $0x75] sm:$0x3] }
 0x3d1   : > { %v3675_v60 = vpop.f32.mrb[10].mxu1 }
 0x3d2   : > { %v3676_v61 = vadd.f32 %v3675_v60, %v3604_v58  ;;  %v10297_v47 = vpop.f32.mrb[11].mxu1  ;;  %v6056_v58 = vand.u32 4294901760, %v6055_v56  ;;  %v5058_v60 = vsel %vm4603_vm10, %v5056_v59, 0 }
 0x3d5   : > { %v3754_v0 = vpop.f32.mrb[12].mxu1 }
 0x3d6   : > { %v3755_v9 = vadd.f32 %v3754_v0, %v3676_v61  ;;  %v10302_v2 = vpop.f32.mrb[13].mxu1  ;;  %v5061_v61 = vand.u32 4294901760, %v5058_v60 }
 0x3d8   : > { %v5138_v47 = vsub.f32 %v5058_v60, %v5061_v61 }
 0x3d9   : > { %v3830_v8 = vpop.f32.mrb[14].mxu1 }
 0x3da   : > { %v3831_v3 = vadd.f32 %v3830_v8, %v3755_v9  ;;  %v10307_v33 = vpop.f32.mrb[15].mxu1  ;;  %v5139_v0 = vand.u32 4294901760, %v5138_v47 }
 0x3dc   : > { %v5140_v9 = vsub.f32 %v5138_v47, %v5139_v0 }
 0x3dd   : > { %v3904_v4 = vpop.f32.mrb[16].mxu1 }
 0x3de   : > { %v3905_v34 = vadd.f32 %v3904_v4, %v3831_v3  ;;  %v10312_v43 = vpop.f32.mrb[17].mxu1 }
 0x3df   : > { %v5055_v43 = vld [vmem:[%s11923_s1 + $0x73] sm:$0x3] }
 0x3e1   : > { %v3978_v6 = vpop.f32.mrb[18].mxu1 }
 0x3e2   : > { %v3979_v7 = vadd.f32 %v3978_v6, %v3905_v34  ;;  %v10317_v10 = vpop.f32.mrb[19].mxu1  ;;  %v6425_v6 = vsel %vm4603_vm10, %v5055_v43, 0 }
 0x3e5   : > { %v4052_v57 = vpop.f32.mrb[20].mxu1 }
 0x3e6   : > { %v4053_v11 = vadd.f32 %v4052_v57, %v3979_v7  ;;  %v10322_v12 = vpop.f32.mrb[21].mxu1  ;;  %v6428_v7 = vand.u32 4294901760, %v6425_v6 }
 0x3e8   : > { %v6505_v10 = vsub.f32 %v6425_v6, %v6428_v7 }
 0x3e9   : > { %v4124_v14 = vpop.f32.mrb[22].mxu1 }
 0x3ea   : > { %v4125_v15 = vadd.f32 %v4124_v14, %v4053_v11  ;;  %v10327_v13 = vpop.f32.mrb[23].mxu1  ;;  %v6506_v57 = vand.u32 4294901760, %v6505_v10  ;;  %v11652_v14 = vld [vmem:[%s11924_s2 + $0x3] ss:$0 sm:$0xff] }
 0x3ec   : > { %v6507_v11 = vsub.f32 %v6505_v10, %v6506_v57 }
 0x3ed   : > { %v4205_v16 = vpop.f32.mrb[24].mxu1 }
 0x3ee   : > { %v10332_v50 = vpop.f32.mrb[25].mxu1  ;;  %v6508_v12 = vand.u32 4294901760, %v6507_v11 }
 0x3f1   : > { %v4281_v63 = vpop.f32.mrb[26].mxu1 }
 0x3f2   : > { %v4282_v17 = vadd.f32 %v4281_v63, %v4205_v16  ;;  %v10337_v18 = vpop.f32.mrb[27].mxu1 }
 0x3f3   : > { %v6879_v18 = vld [vmem:[%s11923_s1 + $0x77] sm:$0xff] }
 0x3f5   : > { %v4355_v19 = vpop.f32.mrb[28].mxu1 }
 0x3f6   : > { %v4356_v20 = vadd.f32 %v4355_v19, %v4282_v17  ;;  %v10342_v23 = vpop.f32.mrb[29].mxu1  ;;  %v7395_v19 = vld [vmem:[%s11923_s1 + $0xb7] sm:$0xff] }
 0x3f9   : > { %v4429_v24 = vpop.f32.mrb[30].mxu1 }
 0x3fa   : > { %v4430_v62 = vadd.f32 %v4429_v24, %v4356_v20  ;;  %v10347_v27 = vpop.f32.mrb[31].mxu1  ;;  %v6888_v20 = vand.u32 4294901760, %v6879_v18  ;;  %v7396_v24 = vld [vmem:[%s11923_s1 + $0xbf] sm:$0xff] }
 0x3fb   : > { %v7401_v27 = vand.u32 4294901760, %v7396_v24 }
 0x3fd   : > { %v4503_v28 = vpop.f32.mrb[32].mxu1 }
 0x3fe   : > { %v4504_v21 = vadd.f32 %v4503_v28, %v4430_v62  ;;  %v10352_v25 = vpop.f32.mrb[33].mxu1  ;;  %v7398_v62 = vand.u32 4294901760, %v7395_v19 }
 0x3ff   : > { %v6976_v25 = vsub.f32 %v6879_v18, %v6888_v20  ;;  %v7391_v18 = vld [vmem:[%s11923_s1 + $0x97] sm:$0xff] }
 0x401   : > { %v4575_v26 = vpop.f32.mrb[34].mxu1 }
 0x402   : > { %v4576_v29 = vadd.f32 %v4575_v26, %v4504_v21  ;;  %v10357_v30 = vpop.f32.mrb[35].mxu1  ;;  %v11669_v21 = vpack.c.bf16 %v7401_v27, %v7398_v62 }
 0x403   : > { %v7493_v30 = vsub.f32 %v7396_v24, %v7401_v27 }
 0x404   : > { %v4579_v35 = vadd.f32 %v4576_v29, %v4125_v15  ;;  %v7486_v29 = vsub.f32 %v7395_v19, %v7398_v62 }
 0x406   : > { %v4585_v36 = vadd.f32 %v9699_v5, %v4579_v35  ;;  %v6977_v5 = vand.u32 4294901760, %v6976_v25  ;;  %v10870_v54 = vpack.c.bf16 %v7493_v30, %v7486_v29 }
 0x408   : > { %v4586_v37 = vmax.f32 %v4585_v36, 0.0  ;;  %v7487_v36 = vand.u32 4294901760, %v7486_v29 }
 0x40a   : > { %4588 = vst.msk [vmem:[#allocation3 + $0x1] sm:$0x7f] %vm4587_vm11, %v4586_v37  ;;  %v7494_v37 = vand.u32 4294901760, %v7493_v30 }
 0x411   : > { %v4589_v38 = vld [vmem:[#allocation3 + $0x1] ss:$2 sm:$0x7]  ;;  %v4590_v40 = vld [vmem:[#allocation3 + $0x2] ss:$2 sm:$0x7] }
 0x412   : > { %v4593_v41 = vmax.f32 %v4589_v38, %v4590_v40  ;;  %v6978_v38 = vsub.f32 %v6976_v25, %v6977_v5 }
 0x414   : > { %4595 = vst.msk [vmem:[#allocation2 + $0x1] sm:$0x7] %vm4594_vm12, %v4593_v41  ;;  %v7488_v41 = vsub.f32 %v7486_v29, %v7487_v36 }
 0x41b   : > { %v4596_v48 = vld [vmem:[#allocation2 + $0x1] sm:$0x7] }
 0x41c   : > { %v4601_v49 = vsel %vm4599_vm13, %v4596_v48, 0  ;;  %v6979_v48 = vand.u32 4294901760, %v6978_v38 }
 0x41d   : > { %v11509_v31 = vand.u32 4294901760, %v4601_v49 }
 0x41f   : > { %v11512_v32 = vsub.f32 %v4601_v49, %v11509_v31 }
 0x421   : > { %v11515_v55 = vand.u32 4294901760, %v11512_v32 }
 0x423   : > { %v4676_v22 = vsub.f32 %v11512_v32, %v11515_v55 }
 0x425   : > { %v11519_v52 = vand.u32 4294901760, %v4676_v22 }
 0x427   : > { %10361 = vmatmul.mubr.f32.vlgmr.msra.gmra.mrb[36].mxu1 %v11519_v52  ;;  %10451 = vmatmul.mubr.f32.vlgmr.msra.gmra.mrb[2].mxu0 %v11519_v52 }
 0x428   : > { %10364 = vmatpush3.msra.mxu1 %v4688_v44  ;;  %10365 = vmatprep.mubr.msk.f32.mxu1 %vm11149_vm6, %v11148_v1 }
 0x429   : > { %10368 = vmatprep.subr.mxu1 %v11148_v1  ;;  %10454 = vmatpush3.msra.mxu0 %v6056_v58 }
 0x42a   : > { %10455 = vmatprep.mubr.msk.f32.mxu0 %vm11149_vm6, %v11148_v1  ;;  %10458 = vmatprep.subr.mxu0 %v11148_v1 }
 0x42f   : > { %10366 = vmatmul.mubr.f32.vlgmr.msra.gmra.mrb[36].mxu1 %v11509_v31  ;;  %10456 = vmatmul.mubr.f32.vlgmr.msra.gmra.mrb[2].mxu0 %v11509_v31 }
 0x430   : > { %10369 = vmatpush3.msra.mxu1 %v4685_v45  ;;  %10370 = vmatprep.mubr.msk.f32.mxu1 %vm11149_vm6, %v11148_v1  ;;  %v7495_v45 = vsub.f32 %v7493_v30, %v7494_v37 }
 0x431   : > { %10373 = vmatprep.subr.mxu1 %v11148_v1  ;;  %10459 = vmatpush3.msra.mxu0 %v6053_v46 }
 0x432   : > { %10460 = vmatprep.mubr.msk.f32.mxu0 %vm11149_vm6, %v11148_v1  ;;  %10463 = vmatprep.subr.mxu0 %v11148_v1 }
 0x437   : > { %10371 = vmatmul.mubr.f32.vlgmr.msra.gmra.mrb[36].mxu1 %v11512_v32  ;;  %10461 = vmatmul.mubr.f32.vlgmr.msra.gmra.mrb[2].mxu0 %v11512_v32 }
 0x438   : > { %10374 = vmatpush3.msra.mxu1 %v11493_v42  ;;  %10375 = vmatprep.mubr.msk.f32.mxu1 %vm11149_vm6, %v11148_v1 }
 0x439   : > { %10378 = vmatprep.subr.mxu1 %v11148_v1  ;;  %10464 = vmatpush3.msra.mxu0 %v11496_v39 }
 0x43a   : > { %10465 = vmatprep.mubr.msk.f32.mxu0 %vm11149_vm6, %v11148_v1  ;;  %10468 = vmatprep.subr.mxu0 %v11148_v1 }
 0x43f   : > { %10376 = vmatmul.mubr.f32.vlgmr.msra.gmra.mrb[36].mxu1 %v11515_v55  ;;  %10466 = vmatmul.mubr.f32.vlgmr.msra.gmra.mrb[2].mxu0 %v11515_v55 }
 0x440   : > { %10379 = vmatpush3.msra.mxu1 %v4686_v51  ;;  %10380 = vmatprep.mubr.msk.f32.mxu1 %vm11149_vm6, %v11148_v1  ;;  %v7489_v51 = vand.u32 4294901760, %v7488_v41 }
 0x441   : > { %10383 = vmatprep.subr.mxu1 %v11148_v1  ;;  %10469 = vmatpush3.msra.mxu0 %v6054_v53 }
 0x442   : > { %10470 = vmatprep.mubr.msk.f32.mxu0 %vm11149_vm6, %v11148_v1  ;;  %10473 = vmatprep.subr.mxu0 %v11148_v1 }
 0x447   : > { %10381 = vmatmul.mubr.f32.vlgmr.msra.gmra.mrb[36].mxu1 %v11509_v31  ;;  %10471 = vmatmul.mubr.f32.vlgmr.msra.gmra.mrb[2].mxu0 %v11509_v31 }
 0x448   : > { %10384 = vmatpush3.msra.mxu1 %v11493_v42  ;;  %10385 = vmatprep.mubr.msk.f32.mxu1 %vm11149_vm6, %v11148_v1  ;;  %v5141_v42 = vand.u32 4294901760, %v5140_v9 }
 0x449   : > { %10388 = vmatprep.subr.mxu1 %v11148_v1  ;;  %10474 = vmatpush3.msra.mxu0 %v11496_v39  ;;  %v5053_v39 = vld [vmem:[%s11923_s1 + $0x6f] sm:$0x3] }
 0x44a   : > { %10475 = vmatprep.mubr.msk.f32.mxu0 %vm11149_vm6, %v11148_v1  ;;  %v5522_v2 = vsel %vm4603_vm10, %v5053_v39, 0 }
 0x44b   : > { %v5525_v8 = vand.u32 4294901760, %v5522_v2 }
 0x44d   : > { %v5602_v3 = vsub.f32 %v5522_v2, %v5525_v8 }
 0x44f   : > { %10386 = vmatmul.mubr.f32.vlgmr.msra.gmra.mrb[36].mxu1 %v11509_v31  ;;  %10476 = vmatmul.mubr.f32.vlgmr.msra.gmra.mrb[2].mxu0 %v11509_v31  ;;  %v5603_v33 = vand.u32 4294901760, %v5602_v3 }
 0x450   : > { %10389 = vmatpush3.msra.mxu1 %v5061_v61  ;;  %10390 = vmatprep.mubr.msk.f32.mxu1 %vm11149_vm6, %v11148_v1 }
 0x451   : > { %10393 = vmatprep.subr.mxu1 %v11148_v1  ;;  %v5604_v4 = vsub.f32 %v5602_v3, %v5603_v33 }
 0x453   : > { %10391 = vmatmul.mubr.f32.vlgmr.msra.gmra.mrb[38].mxu1 %v11519_v52  ;;  %v5605_v34 = vand.u32 4294901760, %v5604_v4 }
 0x454   : > { %10394 = vmatpush3.msra.mxu1 %v5141_v42  ;;  %10395 = vmatprep.mubr.msk.f32.mxu1 %vm11149_vm6, %v11148_v1 }
 0x455   : > { %10398 = vmatprep.subr.mxu1 %v11148_v1 }
 0x45b   : > { %10396 = vmatmul.mubr.f32.vlgmr.msra.gmra.mrb[38].mxu1 %v11509_v31 }
 0x45c   : > { %10399 = vmatpush3.msra.mxu1 %v5138_v47  ;;  %10400 = vmatprep.mubr.msk.f32.mxu1 %vm11149_vm6, %v11148_v1  ;;  %v11679_v47 = vpack.c.bf16 %v7494_v37, %v7487_v36 }
 0x45d   : > { %10403 = vmatprep.subr.mxu1 %v11148_v1 }
 0x463   : > { %10401 = vmatmul.mubr.f32.vlgmr.msra.gmra.mrb[38].mxu1 %v11512_v32 }
 0x464   : > { %10404 = vmatpush3.msra.mxu1 %v5061_v61  ;;  %10405 = vmatprep.mubr.msk.f32.mxu1 %vm11149_vm6, %v11148_v1 }
 0x465   : > { %10408 = vmatprep.subr.mxu1 %v11148_v1 }
 0x46b   : > { %10406 = vmatmul.mubr.f32.vlgmr.msra.gmra.mrb[38].mxu1 %v11515_v55 }
 0x46c   : > { %10409 = vmatpush3.msra.mxu1 %v5139_v0  ;;  %10410 = vmatprep.mubr.msk.f32.mxu1 %vm11149_vm6, %v11148_v1 }
 0x46d   : > { %10413 = vmatprep.subr.mxu1 %v11148_v1 }
 0x473   : > { %10411 = vmatmul.mubr.f32.vlgmr.msra.gmra.mrb[38].mxu1 %v11509_v31 }
 0x474   : > { %10414 = vmatpush3.msra.mxu1 %v5061_v61  ;;  %10415 = vmatprep.mubr.msk.f32.mxu1 %vm11149_vm6, %v11148_v1 }
 0x475   : > { %10418 = vmatprep.subr.mxu1 %v11148_v1 }
 0x47b   : > { %10416 = vmatmul.mubr.f32.vlgmr.msra.gmra.mrb[38].mxu1 %v11509_v31 }
 0x47c   : > { %10419 = vmatpush3.msra.mxu1 %v5525_v8  ;;  %10420 = vmatprep.mubr.msk.f32.mxu1 %vm11149_vm6, %v11148_v1 }
 0x47d   : > { %10423 = vmatprep.subr.mxu1 %v11148_v1 }
 0x47f   : > { %10421 = vmatmul.mubr.f32.vlgmr.msra.gmra.mrb[40].mxu1 %v11519_v52 }
 0x480   : > { %10424 = vmatpush3.msra.mxu1 %v5605_v34  ;;  %10425 = vmatprep.mubr.msk.f32.mxu1 %vm11149_vm6, %v11148_v1 }
 0x481   : > { %10428 = vmatprep.subr.mxu1 %v11148_v1 }
 0x487   : > { %10426 = vmatmul.mubr.f32.vlgmr.msra.gmra.mrb[40].mxu1 %v11509_v31 }
 0x488   : > { %10429 = vmatpush3.msra.mxu1 %v5602_v3  ;;  %10430 = vmatprep.mubr.msk.f32.mxu1 %vm11149_vm6, %v11148_v1 }
 0x489   : > { %10433 = vmatprep.subr.mxu1 %v11148_v1 }
 0x48f   : > { %10431 = vmatmul.mubr.f32.vlgmr.msra.gmra.mrb[40].mxu1 %v11512_v32 }
 0x490   : > { %10434 = vmatpush3.msra.mxu1 %v5525_v8  ;;  %10435 = vmatprep.mubr.msk.f32.mxu1 %vm11149_vm6, %v11148_v1 }
 0x491   : > { %10438 = vmatprep.subr.mxu1 %v11148_v1 }
 0x497   : > { %10436 = vmatmul.mubr.f32.vlgmr.msra.gmra.mrb[40].mxu1 %v11515_v55 }
 0x498   : > { %10439 = vmatpush3.msra.mxu1 %v5603_v33  ;;  %10440 = vmatprep.mubr.msk.f32.mxu1 %vm11149_vm6, %v11148_v1 }
 0x499   : > { %10443 = vmatprep.subr.mxu1 %v11148_v1 }
 0x49f   : > { %10441 = vmatmul.mubr.f32.vlgmr.msra.gmra.mrb[40].mxu1 %v11509_v31 }
 0x4a0   : > { %10444 = vmatpush3.msra.mxu1 %v5525_v8  ;;  %10445 = vmatprep.mubr.msk.f32.mxu1 %vm11149_vm6, %v11148_v1 }
 0x4a1   : > { %10478 = vmatprep.subr.mxu1 %v11148_v1 }
 0x4a7   : > { %10446 = vmatmul.mubr.f32.vlgmr.msra.gmra.mrb[40].mxu1 %v11509_v31 }
 0x4a8   : > { %10479 = vmatpush3.msra.mxu1 %v6428_v7  ;;  %10480 = vmatprep.mubr.msk.f32.mxu1 %vm11149_vm6, %v11148_v1 }
 0x4a9   : > { %10483 = vmatprep.subr.mxu1 %v11148_v1 }
 0x4ab   : > { %10481 = vmatmul.mubr.f32.vlgmr.msra.gmra.mrb[42].mxu1 %v11519_v52 }
 0x4ac   : > { %10484 = vmatpush3.msra.mxu1 %v6508_v12  ;;  %10485 = vmatprep.mubr.msk.f32.mxu1 %vm11149_vm6, %v11148_v1 }
 0x4ad   : > { %10488 = vmatprep.subr.mxu1 %v11148_v1 }
 0x4b3   : > { %10486 = vmatmul.mubr.f32.vlgmr.msra.gmra.mrb[42].mxu1 %v11509_v31 }
 0x4b4   : > { %10489 = vmatpush3.msra.mxu1 %v6505_v10  ;;  %10490 = vmatprep.mubr.msk.f32.mxu1 %vm11149_vm6, %v11148_v1 }
 0x4b5   : > { %10493 = vmatprep.subr.mxu1 %v11148_v1 }
 0x4bb   : > { %10491 = vmatmul.mubr.f32.vlgmr.msra.gmra.mrb[42].mxu1 %v11512_v32 }
 0x4bc   : > { %10494 = vmatpush3.msra.mxu1 %v6428_v7  ;;  %10495 = vmatprep.mubr.msk.f32.mxu1 %vm11149_vm6, %v11148_v1 }
 0x4bd   : > { %10498 = vmatprep.subr.mxu1 %v11148_v1 }
 0x4c3   : > { %10496 = vmatmul.mubr.f32.vlgmr.msra.gmra.mrb[42].mxu1 %v11515_v55 }
 0x4c4   : > { %10499 = vmatpush3.msra.mxu1 %v6506_v57  ;;  %10500 = vmatprep.mubr.msk.f32.mxu1 %vm11149_vm6, %v11148_v1 }
 0x4c5   : > { %10503 = vmatprep.subr.mxu1 %v11148_v1 }
 0x4cb   : > { %10501 = vmatmul.mubr.f32.vlgmr.msra.gmra.mrb[42].mxu1 %v11509_v31 }
 0x4cc   : > { %10504 = vmatpush3.msra.mxu1 %v6428_v7  ;;  %10505 = vmatprep.mubr.msk.f32.mxu1 %vm11149_vm6, %v11148_v1  ;;  %v6880_v1 = vld [vmem:[%s11923_s1 + $0x7f] sm:$0xff] }
 0x4cd   : > { %v6891_v23 = vand.u32 4294901760, %v6880_v1  ;;  %10863 = vmatprep.subr.bf16.mxu1 %v11669_v21 }
 0x4cf   : > { %v11667_v28 = vpack.c.bf16 %v6891_v23, %v6888_v20  ;;  %v6983_v26 = vsub.f32 %v6880_v1, %v6891_v23  ;;  %v7392_v1 = vld [vmem:[%s11923_s1 + $0x9f] sm:$0xff]  ;;  %v8428_v23 = vand.u32 4294901760, %v7391_v18 }
 0x4d0   : > { %v8431_v24 = vand.u32 4294901760, %v7392_v1 }
 0x4d1   : > { %10839 = vmatprep.subr.bf16.mxu0 %v11667_v28  ;;  %v6984_v35 = vand.u32 4294901760, %v6983_v26  ;;  %v10846_v46 = vpack.c.bf16 %v6983_v26, %v6976_v25  ;;  %v11743_v25 = vsub.f32 %v7391_v18, %v8428_v23 }
 0x4d2   : > { %10841 = vmatpush3.bf16.msra.mxu0 %v11667_v28  ;;  %v11760_v37 = vpack.c.bf16 %v8431_v24, %v8428_v23 }
 0x4d3   : > { %10506 = vmatmul.mubr.f32.vlgmr.msra.gmra.mrb[42].mxu1 %v11509_v31  ;;  %v6985_v40 = vsub.f32 %v6983_v26, %v6984_v35  ;;  %v7496_v31 = vand.u32 4294901760, %v7495_v45  ;;  %v11676_v58 = vpack.c.bf16 %v6984_v35, %v6977_v5  ;;  %v11745_v26 = vsub.f32 %v7392_v1, %v8431_v24 }
 0x4d4   : > { %10865 = vmatpush3.bf16.msra.mxu1 %v11669_v21  ;;  %v8517_v5 = vand.u32 4294901760, %v11743_v25 }
 0x4d5   : > { %v6986_v49 = vand.u32 4294901760, %v6985_v40  ;;  %v10866_v32 = vpack.c.bf16 %v7496_v31, %v7489_v51  ;;  %v8524_v35 = vand.u32 4294901760, %v11745_v26 }
 0x4d6   : > { %v8518_v41 = vsub.f32 %v11743_v25, %v8517_v5 }
 0x4d7   : > { %v10842_v53 = vpack.c.bf16 %v6986_v49, %v6979_v48  ;;  %10867 = vmatprep.subr.bf16.mxu1 %v10866_v32  ;;  %v8525_v45 = vsub.f32 %v11745_v26, %v8524_v35 }
 0x4d8   : > { %v8519_v49 = vand.u32 4294901760, %v8518_v41 }
 0x4d9   : > { %10843 = vmatprep.subr.bf16.mxu0 %v10842_v53  ;;  %v8526_v51 = vand.u32 4294901760, %v8525_v45 }
 0x522   : > { %v5049_v15 = vpop.f32.mrb[36].mxu1  ;;  %v6417_v13 = vpop.f32.mrb[2].mxu0 }
 0x523   : > { %v10959_v16 = vadd.f32 %v11652_v14, %v6417_v13  ;;  %v10387_v50 = vpop.f32.mrb[37].mxu1  ;;  %v10477_v63 = vpop.f32.mrb[3].mxu0  ;;  %v5507_v44 = vsel %vm5506_vm14, %v5049_v15, 0.0 }
 0x524   : > { %v7389_v63 = vld [vmem:[%s11923_s1 + $0x87] sm:$0xff] }
 0x525   : > { %v6421_v17 = vmax.f32 %v10959_v16, 0.0  ;;  %v7922_v19 = vand.u32 4294901760, %v7389_v63 }
 0x527   : > { %6423 = vst [vmem:[#allocation3 + $0x3] ss:$4 sm:$0x7] %v6421_v17  ;;  %v7390_v17 = vld [vmem:[%s11923_s1 + $0x8f] sm:$0xff]  ;;  %v11741_v62 = vsub.f32 %v7389_v63, %v7922_v19 }
 0x528   : > { %v7925_v20 = vand.u32 4294901760, %v7390_v17 }
 0x529   : > { %v8011_v29 = vand.u32 4294901760, %v11741_v62 }
 0x52a   : > { %v8017_v27 = vsub.f32 %v7390_v17, %v7925_v20  ;;  %v11758_v36 = vpack.c.bf16 %v7925_v20, %v7922_v19 }
 0x52b   : > { %v8012_v38 = vsub.f32 %v11741_v62, %v8011_v29 }
 0x52c   : > { %v8018_v30 = vand.u32 4294901760, %v8017_v27 }
 0x52e   : > { %v8019_v40 = vsub.f32 %v8017_v27, %v8018_v30 }
 0x530   : > { %v8020_v48 = vand.u32 4294901760, %v8019_v40  ;;  %v9702_v40 = vld [vmem:[%s11923_s1 + $0xc7] ss:$0 sm:$0xff] }
 0x54e   : > { %v5502_v55 = vpop.f32.mrb[38].mxu1 }
 0x54f   : > { %v5509_v56 = vrot.slane %v5502_v55, 7  ;;  %v10417_v22 = vpop.f32.mrb[39].mxu1  ;;  %v7394_v55 = vld [vmem:[%s11923_s1 + $0xaf] sm:$0xff] }
 0x551   : > { %v5512_v52 = vsel %vm5511_vm15, 0.0, %v5509_v56  ;;  %v10926_v56 = vpack.c.bf16 %v8524_v35, %v8517_v5 }
 0x552   : > { %v5513_v59 = vadd.f32 %v5512_v52, %v5507_v44  ;;  %v8937_v44 = vand.u32 4294901760, %v7394_v55 }
 0x554   : > { %v5518_v60 = vadd.f32 %v11652_v14, %v5513_v59 }
 0x556   : > { %v5519_v61 = vmax.f32 %v5518_v60, 0.0 }
 0x558   : > { %5520 = vst [vmem:[#allocation3 + $0x1] ss:$4 sm:$0xf] %v5519_v61 }
 0x57a   : > { %v5966_v0 = vpop.f32.mrb[40].mxu1 }
 0x57b   : > { %v10958_v9 = vadd.f32 %v11652_v14, %v5966_v0  ;;  %v10447_v42 = vpop.f32.mrb[41].mxu1 }
 0x57d   : > { %v5970_v39 = vmax.f32 %v10958_v9, 0.0 }
 0x57f   : > { %5971 = vst [vmem:[#allocation3 + $0x2] ss:$4 sm:$0x7] %v5970_v39 }
 0x5a6   : > { %v6869_v2 = vpop.f32.mrb[42].mxu1 }
 0x5a7   : > { %v10960_v8 = vadd.f32 %v11652_v14, %v6869_v2  ;;  %v10507_v3 = vpop.f32.mrb[43].mxu1 }
 0x5a9   : > { %v6873_v33 = vmax.f32 %v10960_v8, 0.0 }
 0x5ab   : > { %6875 = vst [vmem:[#allocation3 + $0x4] ss:$4 sm:$0x7] %v6873_v33 }
 0x5b2   : > { %v6876_v4 = vld [vmem:[#allocation3 + $0x1] sm:$0xff]  ;;  %v6877_v34 = vld [vmem:[#allocation3 + $0x9] sm:$0x1f] }
 0x5b3   : > { %v6882_v43 = vsel %vm603_vm3, %v6876_v4, 0  ;;  %v6885_v6 = vsel %vm603_vm3, %v6877_v34, 0 }
 0x5b4   : > { %v11685_v7 = vand.u32 4294901760, %v6882_v43  ;;  %v11687_v10 = vand.u32 4294901760, %v6885_v6 }
 0x5b6   : > { %v11690_v57 = vsub.f32 %v6882_v43, %v11685_v7  ;;  %v11693_v11 = vsub.f32 %v6885_v6, %v11687_v10 }
 0x5b8   : > { %v11696_v12 = vand.u32 4294901760, %v11690_v57  ;;  %v11699_v14 = vand.u32 4294901760, %v11693_v11 }
 0x5ba   : > { %v6957_v15 = vsub.f32 %v11690_v57, %v11696_v12  ;;  %v6967_v13 = vsub.f32 %v11693_v11, %v11699_v14 }
 0x5bc   : > { %v11705_v16 = vand.u32 4294901760, %v6957_v15  ;;  %v11707_v50 = vand.u32 4294901760, %v6967_v13 }
 0x5be   : > { %10512 = vmatprep.mubr.f32.mxu0 %v11705_v16  ;;  %10554 = vmatprep.mubr.f32.mxu1 %v11705_v16 }
 0x5bf   : > { %10513 = vmatmul.mubr.f32.vlgmr.msra.gmra.mrb[4].mxu0 %v11707_v50  ;;  %10555 = vmatmul.mubr.f32.vlgmr.msra.gmra.mrb[44].mxu1 %v11707_v50 }
 0x5c0   : > { %10845 = vmatpush3.bf16.msra.mxu0 %v10842_v53  ;;  %10519 = vmatprep.mubr.f32.mxu0 %v11685_v7  ;;  %v10914_v53 = vpack.c.bf16 %v8526_v51, %v8519_v49 }
 0x5c1   : > { %10561 = vmatprep.mubr.f32.mxu1 %v11685_v7  ;;  %10869 = vmatpush3.bf16.msra.mxu1 %v10866_v32  ;;  %v10902_v32 = vpack.c.bf16 %v8018_v30, %v8011_v29 }
 0x5c2   : > { %10847 = vmatprep.subr.bf16.mxu0 %v10846_v46  ;;  %10871 = vmatprep.subr.bf16.mxu1 %v10870_v54 }
 0x5c7   : > { %10520 = vmatmul.mubr.f32.vlgmr.msra.gmra.mrb[4].mxu0 %v11687_v10  ;;  %10562 = vmatmul.mubr.f32.vlgmr.msra.gmra.mrb[44].mxu1 %v11687_v10 }
 0x5c8   : > { %10849 = vmatpush3.bf16.msra.mxu0 %v10846_v46  ;;  %10526 = vmatprep.mubr.f32.mxu0 %v11690_v57  ;;  %v8013_v46 = vand.u32 4294901760, %v8012_v38  ;;  %v9704_v38 = vld [vmem:[%s11923_s1 + $0xc9] ss:$0 sm:$0xff] }
 0x5c9   : > { %10568 = vmatprep.mubr.f32.mxu1 %v11690_v57  ;;  %10873 = vmatpush3.bf16.msra.mxu1 %v10870_v54  ;;  %v7393_v54 = vld [vmem:[%s11923_s1 + $0xa7] sm:$0xff] }
 0x5ca   : > { %10851 = vmatprep.subr.bf16.mxu0 %v11667_v28  ;;  %10875 = vmatprep.subr.bf16.mxu1 %v11669_v21  ;;  %v10890_v31 = vpack.c.bf16 %v8020_v48, %v8013_v46  ;;  %v8934_v22 = vand.u32 4294901760, %v7393_v54 }
 0x5cc   : > { %v9022_v52 = vsub.f32 %v7393_v54, %v8934_v22  ;;  %v10934_v0 = vpack.c.bf16 %v8937_v44, %v8934_v22  ;;  %v9703_v22 = vld [vmem:[%s11923_s1 + $0xc8] ss:$0 sm:$0xff] }
 0x5ce   : > { %v9023_v59 = vand.u32 4294901760, %v9022_v52 }
 0x5cf   : > { %10527 = vmatmul.mubr.f32.vlgmr.msra.gmra.mrb[4].mxu0 %v11693_v11  ;;  %10569 = vmatmul.mubr.f32.vlgmr.msra.gmra.mrb[44].mxu1 %v11693_v11 }
 0x5d0   : > { %10853 = vmatpush3.bf16.msra.mxu0 %v11667_v28  ;;  %10533 = vmatprep.mubr.f32.mxu0 %v11696_v12  ;;  %v9024_v61 = vsub.f32 %v9022_v52, %v9023_v59 }
 0x5d1   : > { %10575 = vmatprep.mubr.f32.mxu1 %v11696_v12  ;;  %10877 = vmatpush3.bf16.msra.mxu1 %v11669_v21 }
 0x5d2   : > { %10855 = vmatprep.subr.bf16.mxu0 %v11676_v58  ;;  %10879 = vmatprep.subr.bf16.mxu1 %v11679_v47  ;;  %v9025_v9 = vand.u32 4294901760, %v9024_v61 }
 0x5d7   : > { %10534 = vmatmul.mubr.f32.vlgmr.msra.gmra.mrb[4].mxu0 %v11699_v14  ;;  %10576 = vmatmul.mubr.f32.vlgmr.msra.gmra.mrb[44].mxu1 %v11699_v14 }
 0x5d8   : > { %10857 = vmatpush3.bf16.msra.mxu0 %v11676_v58  ;;  %10540 = vmatprep.mubr.f32.mxu0 %v11685_v7  ;;  %v9029_v58 = vsub.f32 %v7394_v55, %v8937_v44 }
 0x5d9   : > { %10582 = vmatprep.mubr.f32.mxu1 %v11685_v7  ;;  %10881 = vmatpush3.bf16.msra.mxu1 %v11679_v47 }
 0x5da   : > { %10859 = vmatprep.subr.bf16.mxu0 %v11667_v28  ;;  %10883 = vmatprep.subr.bf16.mxu1 %v11669_v21  ;;  %v9030_v60 = vand.u32 4294901760, %v9029_v58  ;;  %v10942_v2 = vpack.c.bf16 %v9029_v58, %v9022_v52 }
 0x5dc   : > { %v9031_v47 = vsub.f32 %v9029_v58, %v9030_v60  ;;  %v10950_v8 = vpack.c.bf16 %v9030_v60, %v9023_v59 }
 0x5de   : > { %v9032_v42 = vand.u32 4294901760, %v9031_v47 }
 0x5df   : > { %10541 = vmatmul.mubr.f32.vlgmr.msra.gmra.mrb[4].mxu0 %v11687_v10  ;;  %10583 = vmatmul.mubr.f32.vlgmr.msra.gmra.mrb[44].mxu1 %v11687_v10 }
 0x5e0   : > { %10861 = vmatpush3.bf16.msra.mxu0 %v11667_v28  ;;  %10547 = vmatprep.mubr.f32.mxu0 %v11685_v7  ;;  %v10894_v28 = vpack.c.bf16 %v8017_v27, %v11741_v62  ;;  %v10938_v39 = vpack.c.bf16 %v9032_v42, %v9025_v9 }
 0x5e1   : > { %10589 = vmatprep.mubr.f32.mxu1 %v11685_v7  ;;  %10885 = vmatpush3.bf16.msra.mxu1 %v11669_v21  ;;  %v10918_v21 = vpack.c.bf16 %v11745_v26, %v11743_v25 }
 0x5e2   : > { %10887 = vmatprep.subr.bf16.mxu0 %v11758_v36  ;;  %10911 = vmatprep.subr.bf16.mxu1 %v11760_v37 }
 0x5e7   : > { %10548 = vmatmul.mubr.f32.vlgmr.msra.gmra.mrb[4].mxu0 %v11687_v10  ;;  %10590 = vmatmul.mubr.f32.vlgmr.msra.gmra.mrb[44].mxu1 %v11687_v10 }
 0x5e8   : > { %10889 = vmatpush3.bf16.msra.mxu0 %v11758_v36  ;;  %10596 = vmatprep.mubr.f32.mxu0 %v11705_v16 }
 0x5e9   : > { %10913 = vmatpush3.bf16.msra.mxu1 %v11760_v37  ;;  %10638 = vmatprep.mubr.f32.mxu1 %v11705_v16 }
 0x5ea   : > { %10891 = vmatprep.subr.bf16.mxu0 %v10890_v31  ;;  %10915 = vmatprep.subr.bf16.mxu1 %v10914_v53 }
 0x5eb   : > { %10597 = vmatmul.mubr.f32.vlgmr.msra.gmra.mrb[6].mxu0 %v11707_v50 }
 0x5ec   : > { %10893 = vmatpush3.bf16.msra.mxu0 %v10890_v31  ;;  %10639 = vmatmul.mubr.f32.vlgmr.msra.gmra.mrb[46].mxu1 %v11707_v50 }
 0x5ed   : > { %10603 = vmatprep.mubr.f32.mxu0 %v11685_v7  ;;  %10645 = vmatprep.mubr.f32.mxu1 %v11685_v7 }
 0x5ee   : > { %10917 = vmatpush3.bf16.msra.mxu1 %v10914_v53  ;;  %10895 = vmatprep.subr.bf16.mxu0 %v10894_v28 }
 0x5ef   : > { %10919 = vmatprep.subr.bf16.mxu1 %v10918_v21 }
 0x5f3   : > { %10604 = vmatmul.mubr.f32.vlgmr.msra.gmra.mrb[6].mxu0 %v11687_v10 }
 0x5f4   : > { %10897 = vmatpush3.bf16.msra.mxu0 %v10894_v28  ;;  %10646 = vmatmul.mubr.f32.vlgmr.msra.gmra.mrb[46].mxu1 %v11687_v10 }
 0x5f5   : > { %10610 = vmatprep.mubr.f32.mxu0 %v11690_v57  ;;  %10652 = vmatprep.mubr.f32.mxu1 %v11690_v57 }
 0x5f6   : > { %10921 = vmatpush3.bf16.msra.mxu1 %v10918_v21  ;;  %10899 = vmatprep.subr.bf16.mxu0 %v11758_v36 }
 0x5f7   : > { %10923 = vmatprep.subr.bf16.mxu1 %v11760_v37 }
 0x5fb   : > { %10611 = vmatmul.mubr.f32.vlgmr.msra.gmra.mrb[6].mxu0 %v11693_v11 }
 0x5fc   : > { %10901 = vmatpush3.bf16.msra.mxu0 %v11758_v36  ;;  %10653 = vmatmul.mubr.f32.vlgmr.msra.gmra.mrb[46].mxu1 %v11693_v11 }
 0x5fd   : > { %10617 = vmatprep.mubr.f32.mxu0 %v11696_v12  ;;  %10659 = vmatprep.mubr.f32.mxu1 %v11696_v12 }
 0x5fe   : > { %10925 = vmatpush3.bf16.msra.mxu1 %v11760_v37  ;;  %10903 = vmatprep.subr.bf16.mxu0 %v10902_v32 }
 0x5ff   : > { %10927 = vmatprep.subr.bf16.mxu1 %v10926_v56 }
 0x603   : > { %10618 = vmatmul.mubr.f32.vlgmr.msra.gmra.mrb[6].mxu0 %v11699_v14 }
 0x604   : > { %10905 = vmatpush3.bf16.msra.mxu0 %v10902_v32  ;;  %10660 = vmatmul.mubr.f32.vlgmr.msra.gmra.mrb[46].mxu1 %v11699_v14 }
 0x605   : > { %10624 = vmatprep.mubr.f32.mxu0 %v11685_v7  ;;  %10666 = vmatprep.mubr.f32.mxu1 %v11685_v7 }
 0x606   : > { %10929 = vmatpush3.bf16.msra.mxu1 %v10926_v56  ;;  %10907 = vmatprep.subr.bf16.mxu0 %v11758_v36 }
 0x607   : > { %10931 = vmatprep.subr.bf16.mxu1 %v11760_v37 }
 0x60b   : > { %10625 = vmatmul.mubr.f32.vlgmr.msra.gmra.mrb[6].mxu0 %v11687_v10 }
 0x60c   : > { %10909 = vmatpush3.bf16.msra.mxu0 %v11758_v36  ;;  %10667 = vmatmul.mubr.f32.vlgmr.msra.gmra.mrb[46].mxu1 %v11687_v10 }
 0x60d   : > { %10631 = vmatprep.mubr.f32.mxu0 %v11685_v7  ;;  %10673 = vmatprep.mubr.f32.mxu1 %v11685_v7 }
 0x60e   : > { %10933 = vmatpush3.bf16.msra.mxu1 %v11760_v37  ;;  %10935 = vmatprep.subr.bf16.mxu0 %v10934_v0 }
 0x613   : > { %10632 = vmatmul.mubr.f32.vlgmr.msra.gmra.mrb[6].mxu0 %v11687_v10 }
 0x614   : > { %10674 = vmatmul.mubr.f32.vlgmr.msra.gmra.mrb[46].mxu1 %v11687_v10  ;;  %10937 = vmatpush3.bf16.msra.mxu0 %v10934_v0 }
 0x615   : > { %10680 = vmatprep.mubr.f32.mxu0 %v11705_v16  ;;  %10939 = vmatprep.subr.bf16.mxu0 %v10938_v39 }
 0x617   : > { %10681 = vmatmul.mubr.f32.vlgmr.msra.gmra.mrb[8].mxu0 %v11707_v50 }
 0x618   : > { %10941 = vmatpush3.bf16.msra.mxu0 %v10938_v39  ;;  %10687 = vmatprep.mubr.f32.mxu0 %v11685_v7 }
 0x619   : > { %10943 = vmatprep.subr.bf16.mxu0 %v10942_v2 }
 0x61f   : > { %10688 = vmatmul.mubr.f32.vlgmr.msra.gmra.mrb[8].mxu0 %v11687_v10 }
 0x620   : > { %10945 = vmatpush3.bf16.msra.mxu0 %v10942_v2  ;;  %10694 = vmatprep.mubr.f32.mxu0 %v11690_v57 }
 0x621   : > { %10947 = vmatprep.subr.bf16.mxu0 %v10934_v0 }
 0x627   : > { %10695 = vmatmul.mubr.f32.vlgmr.msra.gmra.mrb[8].mxu0 %v11693_v11 }
 0x628   : > { %10949 = vmatpush3.bf16.msra.mxu0 %v10934_v0  ;;  %10701 = vmatprep.mubr.f32.mxu0 %v11696_v12 }
 0x629   : > { %10951 = vmatprep.subr.bf16.mxu0 %v10950_v8 }
 0x62f   : > { %10702 = vmatmul.mubr.f32.vlgmr.msra.gmra.mrb[8].mxu0 %v11699_v14  ;;  %v9701_v14 = vld [vmem:[%s11924_s2 + $0x4] ss:$0 sm:$0xff] }
 0x630   : > { %10953 = vmatpush3.bf16.msra.mxu0 %v10950_v8  ;;  %10708 = vmatprep.mubr.f32.mxu0 %v11685_v7 }
 0x631   : > { %10955 = vmatprep.subr.bf16.mxu0 %v10934_v0 }
 0x637   : > { %10709 = vmatmul.mubr.f32.vlgmr.msra.gmra.mrb[8].mxu0 %v11687_v10 }
 0x638   : > { %10957 = vmatpush3.bf16.msra.mxu0 %v10934_v0  ;;  %10715 = vmatprep.mubr.f32.mxu0 %v11685_v7 }
 0x63f   : > { %10716 = vmatmul.mubr.f32.vlgmr.msra.gmra.mrb[8].mxu0 %v11687_v10 }
 0x6ba   : > { %v10549_v3 = vpop.f32.mrb[4].mxu0  ;;  %v10591_v33 = vpop.f32.mrb[44].mxu1 }
 0x6bb   : > { %v7904_v4 = vrot.slane %v10591_v33, 7  ;;  %v7379_v34 = vpop.f32.mrb[5].mxu0  ;;  %v7889_v43 = vpop.f32.mrb[45].mxu1  ;;  %v7900_v57 = vsel %vm7899_vm0, %v10549_v3, 0.0 }
 0x6bc   : > { %v7903_v6 = vrot.slane %v7889_v43, 7 }
 0x6be   : > { %v7905_v11 = vsel %vm5511_vm15, %v7903_v6, %v7904_v4  ;;  %v7908_v12 = vsel %vm5511_vm15, 0.0, %v7903_v6 }
 0x6bf   : > { %v7909_v7 = vadd.f32 %v7908_v12, %v7379_v34  ;;  %v7910_v15 = vadd.f32 %v7905_v11, %v7900_v57 }
 0x6c1   : > { %v7915_v10 = vadd.f32 %v9701_v14, %v7909_v7  ;;  %v7916_v13 = vadd.f32 %v9701_v14, %v7910_v15 }
 0x6c3   : > { %v7917_v16 = vmax.f32 %v7915_v10, 0.0  ;;  %v7918_v50 = vmax.f32 %v7916_v13, 0.0 }
 0x6c5   : > { %7919 = vst [vmem:[#allocation2 + $0x1] ss:$4 sm:$0xff] %v7917_v16  ;;  %7920 = vst [vmem:[#allocation2 + $0x21] ss:$4 sm:$0x3f] %v7918_v50 }
 0x6e6   : > { %v10633_v63 = vpop.f32.mrb[6].mxu0 }
 0x6e7   : > { %v10961_v17 = vadd.f32 %v10633_v63, %v9701_v14  ;;  %v10675_v18 = vpop.f32.mrb[46].mxu1  ;;  %v8413_v1 = vpop.f32.mrb[7].mxu0 }
 0x6e8   : > { %v10963_v19 = vadd.f32 %v10675_v18, %v9701_v14  ;;  %v10962_v20 = vadd.f32 %v9701_v14, %v8413_v1  ;;  %v8919_v23 = vpop.f32.mrb[47].mxu1 }
 0x6e9   : > { %v8424_v24 = vmax.f32 %v10961_v17, 0.0  ;;  %v10964_v62 = vadd.f32 %v9701_v14, %v8919_v23 }
 0x6ea   : > { %v8930_v27 = vmax.f32 %v10963_v19, 0.0  ;;  %v8423_v25 = vmax.f32 %v10962_v20, 0.0 }
 0x6eb   : > { %8426 = vst [vmem:[#allocation2 + $0x22] ss:$4 sm:$0x1f] %v8424_v24  ;;  %v8929_v26 = vmax.f32 %v10964_v62, 0.0 }
 0x6ec   : > { %8932 = vst [vmem:[#allocation2 + $0x23] ss:$4 sm:$0x1f] %v8930_v27  ;;  %8425 = vst [vmem:[#allocation2 + $0x2] ss:$4 sm:$0xff] %v8423_v25 }
 0x6ed   : > { %8931 = vst [vmem:[#allocation2 + $0x3] ss:$4 sm:$0xff] %v8929_v26 }
 0x712   : > { %v10717_v29 = vpop.f32.mrb[8].mxu0 }
 0x713   : > { %v10965_v30 = vadd.f32 %v10717_v29, %v9701_v14  ;;  %v9425_v5 = vpop.f32.mrb[9].mxu0 }
 0x714   : > { %v10966_v35 = vadd.f32 %v9701_v14, %v9425_v5  ;;  %v11876_v5 = vld [vmem:[%s11924_s2 + $0x5] ss:$0 sm:$0xff] }
 0x715   : > { %v9436_v36 = vmax.f32 %v10965_v30, 0.0 }
 0x716   : > { %v9435_v37 = vmax.f32 %v10966_v35, 0.0 }
 0x717   : > { %9438 = vst [vmem:[#allocation2 + $0x24] ss:$4 sm:$0x1f] %v9436_v36 }
 0x718   : > { %9437 = vst [vmem:[#allocation2 + $0x4] ss:$4 sm:$0xff] %v9435_v37 }
 0x71e   : > { %v9444_v41 = vld [vmem:[#allocation2 + $0x29] sm:$0xff]  ;;  %v11842_v45 = vld [vmem:[#allocation2 + $0x21] sm:$0xff]  ;;  %v9445_v46 = vld [vmem:[#allocation2 + $0x31] sm:$0x1f] }
 0x71f   : > { %v9524_v48 = vmul.f32 %v9704_v38, %v9444_v41  ;;  %v9523_v49 = vmul.f32 %v9704_v38, %v11842_v45  ;;  %v9458_v53 = vmul.f32 %v9702_v40, %v9445_v46  ;;  %v9525_v28 = vmul.f32 %v9704_v38, %v9445_v46  ;;  %v9439_v56 = vld [vmem:[#allocation2 + $0x1] sm:$0xff]  ;;  %v9441_v60 = vld [vmem:[#allocation2 + $0x11] sm:$0xff]  ;;  %v9440_v61 = vld [vmem:[#allocation2 + $0x9] sm:$0xff] }
 0x720   : > { %v9457_v54 = vmul.f32 %v9702_v40, %v9444_v41  ;;  %v9456_v55 = vmul.f32 %v9702_v40, %v11842_v45  ;;  %v9519_v58 = vmul.f32 %v9704_v38, %v9439_v56  ;;  %v9492_v59 = vmul.f32 %v9703_v22, %v9445_v46  ;;  %v9442_v39 = vld [vmem:[#allocation2 + $0x19] sm:$0xff] }
 0x721   : > { %v9541_v51 = vsel %vm3215_vm8, %v9524_v48, 0.0  ;;  %v9538_v31 = vsel %vm3215_vm8, %v9523_v49, 0.0  ;;  %v9478_v21 = vsel %vm9477_vm1, %v9458_v53, 0.0  ;;  %v9544_v32 = vsel %vm9477_vm1, %v9525_v28, 0.0 }
 0x722   : > { %9542 = vadd.xlane.f32.xlu0 %v9541_v51  ;;  %9539 = vadd.xlane.f32.xlu1 %v9538_v31  ;;  %v9474_v44 = vsel %vm3215_vm8, %v9457_v54, 0.0  ;;  %v9471_v52 = vsel %vm3215_vm8, %v9456_v55, 0.0  ;;  %v9526_v47 = vsel %vm3215_vm8, %v9519_v58, 0.0  ;;  %v9511_v0 = vsel %vm9477_vm1, %v9492_v59, 0.0 }
 0x723   : > { %v9521_v9 = vmul.f32 %v9704_v38, %v9441_v60  ;;  %v9520_v42 = vmul.f32 %v9704_v38, %v9440_v61  ;;  %v9522_v3 = vmul.f32 %v9704_v38, %v9442_v39  ;;  %v9452_v33 = vmul.f32 %v9702_v40, %v9439_v56 }
 0x724   : > { %v9453_v43 = vmul.f32 %v9702_v40, %v9440_v61  ;;  %v9454_v6 = vmul.f32 %v9702_v40, %v9441_v60  ;;  %v9455_v12 = vmul.f32 %v9702_v40, %v9442_v39  ;;  %v9487_v14 = vmul.f32 %v9703_v22, %v9440_v61 }
 0x725   : > { %v9532_v2 = vsel %vm3215_vm8, %v9521_v9, 0.0  ;;  %v9529_v8 = vsel %vm3215_vm8, %v9520_v42, 0.0  ;;  %v9535_v4 = vsel %vm3215_vm8, %v9522_v3, 0.0  ;;  %v9459_v34 = vsel %vm3215_vm8, %v9452_v33, 0.0 }
 0x726   : > { %9479 = vadd.xlane.f32.xlu0 %v9478_v21  ;;  %9545 = vadd.xlane.f32.xlu1 %v9544_v32  ;;  %v9462_v57 = vsel %vm3215_vm8, %v9453_v43, 0.0  ;;  %v9465_v11 = vsel %vm3215_vm8, %v9454_v6, 0.0  ;;  %v9468_v7 = vsel %vm3215_vm8, %v9455_v12, 0.0  ;;  %v9496_v15 = vsel %vm3215_vm8, %v9487_v14, 0.0 }
 0x727   : > { %v9486_v10 = vmul.f32 %v9703_v22, %v9439_v56  ;;  %v9489_v13 = vmul.f32 %v9703_v22, %v9442_v39  ;;  %v9488_v63 = vmul.f32 %v9703_v22, %v9441_v60  ;;  %v9491_v17 = vmul.f32 %v9703_v22, %v9444_v41 }
 0x728   : > { %v9490_v19 = vmul.f32 %v9703_v22, %v11842_v45 }
 0x729   : > { %v9493_v16 = vsel %vm3215_vm8, %v9486_v10, 0.0  ;;  %v9502_v50 = vsel %vm3215_vm8, %v9489_v13, 0.0  ;;  %v9499_v18 = vsel %vm3215_vm8, %v9488_v63, 0.0  ;;  %v9508_v1 = vsel %vm3215_vm8, %v9491_v17, 0.0 }
 0x72a   : > { %9475 = vadd.xlane.f32.xlu0 %v9474_v44  ;;  %9472 = vadd.xlane.f32.xlu1 %v9471_v52  ;;  %v9505_v20 = vsel %vm3215_vm8, %v9490_v19, 0.0 }
 0x72e   : > { %9527 = vadd.xlane.f32.xlu0 %v9526_v47  ;;  %9512 = vadd.xlane.f32.xlu1 %v9511_v0 }
 0x732   : > { %9533 = vadd.xlane.f32.xlu0 %v9532_v2  ;;  %9530 = vadd.xlane.f32.xlu1 %v9529_v8 }
 0x736   : > { %9536 = vadd.xlane.f32.xlu0 %v9535_v4  ;;  %9460 = vadd.xlane.f32.xlu1 %v9459_v34 }
 0x73a   : > { %9463 = vadd.xlane.f32.xlu0 %v9462_v57  ;;  %9466 = vadd.xlane.f32.xlu1 %v9465_v11 }
 0x73e   : > { %9469 = vadd.xlane.f32.xlu0 %v9468_v7  ;;  %9497 = vadd.xlane.f32.xlu1 %v9496_v15 }
 0x742   : > { %9494 = vadd.xlane.f32.xlu0 %v9493_v16  ;;  %9503 = vadd.xlane.f32.xlu1 %v9502_v50 }
 0x746   : > { %9500 = vadd.xlane.f32.xlu0 %v9499_v18  ;;  %9509 = vadd.xlane.f32.xlu1 %v9508_v1 }
 0x74a   : > { %9506 = vadd.xlane.f32.xlu0 %v9505_v20 }
 0x7af   : > { %v9543_v23 = vpop.xlane.xlu0 %9542  ;;  %v9540_v24 = vpop.xlane.xlu1 %9539 }
 0x7b0   : > { %v9564_v62 = vrot.slane %v9543_v23, 7  ;;  %v9562_v27 = vrot.slane %v9540_v24, 7 }
 0x7b2   : > { %v9565_v38 = vsel %vm5511_vm15, %v9562_v27, %v9564_v62 }
 0x7b3   : > { %v9480_v25 = vpop.xlane.xlu0 %9479  ;;  %v9546_v26 = vpop.xlane.xlu1 %9545 }
 0x7b4   : > { %v9566_v29 = vrot.slane %v9546_v26, 7  ;;  %v9547_v30 = vsel %vm7899_vm0, %v9480_v25, 0.0 }
 0x7b6   : > { %v9567_v35 = vsel %vm5511_vm15, %v9564_v62, %v9566_v29 }
 0x7b7   : > { %v9582_v36 = vadd.f32 %v9567_v35, %v9547_v30  ;;  %v9476_v37 = vpop.xlane.xlu0 %9475  ;;  %v9473_v40 = vpop.xlane.xlu1 %9472 }
 0x7b8   : > { %v9581_v41 = vadd.f32 %v9565_v38, %v9476_v37 }
 0x7b9   : > { %v9593_v45 = vadd.f32 %v11876_v5, %v9582_v36 }
 0x7ba   : > { %v9592_v46 = vadd.f32 %v11876_v5, %v9581_v41 }
 0x7bb   : > { %9711 = vst [vmem:[%s11883_s30 + $0x60] ss:$2 sm:$0x3f] %v9593_v45  ;;  %v9528_v48 = vpop.xlane.xlu0 %9527  ;;  %v9513_v49 = vpop.xlane.xlu1 %9512 }
 0x7bc   : > { %9710 = vst [vmem:[%s11883_s30 + $0x50] ss:$2 sm:$0xff] %v9592_v46  ;;  %v9607_v51 = vsel %vm7899_vm0, %v9513_v49, 0.0  ;;  %v9555_v53 = vrot.slane %v9528_v48, 7 }
 0x7bd   : > { %v9614_v31 = vadd.f32 %v11876_v5, %v9607_v51 }
 0x7be   : > { %v9575_v56 = vsel %vm5511_vm15, 0.0, %v9555_v53 }
 0x7bf   : > { %9718 = vst [vmem:[%s11883_s30 + $0x61] ss:$2 sm:$0x3f] %v9614_v31  ;;  %v9534_v28 = vpop.xlane.xlu0 %9533  ;;  %v9531_v21 = vpop.xlane.xlu1 %9530 }
 0x7c0   : > { %v9558_v32 = vrot.slane %v9534_v28, 7  ;;  %v9556_v54 = vrot.slane %v9531_v21, 7 }
 0x7c2   : > { %v9557_v47 = vsel %vm5511_vm15, %v9555_v53, %v9556_v54  ;;  %v9559_v0 = vsel %vm5511_vm15, %v9556_v54, %v9558_v32 }
 0x7c3   : > { %v9537_v55 = vpop.xlane.xlu0 %9536  ;;  %v9461_v22 = vpop.xlane.xlu1 %9460 }
 0x7c4   : > { %v9560_v44 = vrot.slane %v9537_v55, 7  ;;  %v9576_v52 = vadd.f32 %v9575_v56, %v9461_v22 }
 0x7c6   : > { %v9563_v58 = vsel %vm5511_vm15, %v9560_v44, %v9562_v27  ;;  %v9587_v59 = vadd.f32 %v11876_v5, %v9576_v52  ;;  %v9561_v33 = vsel %vm5511_vm15, %v9558_v32, %v9560_v44 }
 0x7c7   : > { %v9580_v60 = vadd.f32 %v9563_v58, %v9473_v40  ;;  %v9464_v61 = vpop.xlane.xlu0 %9463  ;;  %v9467_v9 = vpop.xlane.xlu1 %9466 }
 0x7c8   : > { %9594 = vst [vmem:[%s11883_s30] ss:$2 sm:$0xff] %v9587_v59  ;;  %v9577_v42 = vadd.f32 %v9557_v47, %v9464_v61  ;;  %v9578_v39 = vadd.f32 %v9559_v0, %v9467_v9 }
 0x7c9   : > { %v9591_v2 = vadd.f32 %v11876_v5, %v9580_v60 }
 0x7ca   : > { %v9588_v8 = vadd.f32 %v11876_v5, %v9577_v42  ;;  %v9589_v3 = vadd.f32 %v11876_v5, %v9578_v39 }
 0x7cb   : > { %9709 = vst [vmem:[%s11883_s30 + $0x40] ss:$2 sm:$0xff] %v9591_v2  ;;  %v9470_v4 = vpop.xlane.xlu0 %9469  ;;  %v9498_v34 = vpop.xlane.xlu1 %9497 }
 0x7cc   : > { %9706 = vst [vmem:[%s11883_s30 + $0x10] ss:$2 sm:$0xff] %v9588_v8  ;;  %9707 = vst [vmem:[%s11883_s30 + $0x20] ss:$2 sm:$0xff] %v9589_v3  ;;  %v9579_v43 = vadd.f32 %v9561_v33, %v9470_v4  ;;  %v9609_v6 = vadd.f32 %v11876_v5, %v9498_v34 }
 0x7ce   : > { %v9590_v57 = vadd.f32 %v11876_v5, %v9579_v43  ;;  %9713 = vst [vmem:[%s11883_s30 + $0x11] ss:$2 sm:$0xff] %v9609_v6 }
 0x7cf   : > { %v9495_v11 = vpop.xlane.xlu0 %9494  ;;  %v9504_v12 = vpop.xlane.xlu1 %9503 }
 0x7d0   : > { %9708 = vst [vmem:[%s11883_s30 + $0x30] ss:$2 sm:$0xff] %v9590_v57  ;;  %v9608_v14 = vadd.f32 %v11876_v5, %v9495_v11  ;;  %v9611_v7 = vadd.f32 %v11876_v5, %v9504_v12 }
 0x7d2   : > { %9712 = vst [vmem:[%s11883_s30 + $0x1] ss:$2 sm:$0xff] %v9608_v14  ;;  %9715 = vst [vmem:[%s11883_s30 + $0x31] ss:$2 sm:$0xff] %v9611_v7 }
 0x7d3   : > { %v9501_v15 = vpop.xlane.xlu0 %9500  ;;  %v9510_v10 = vpop.xlane.xlu1 %9509 }
 0x7d4   : > { %v9610_v13 = vadd.f32 %v11876_v5, %v9501_v15  ;;  %v9613_v16 = vadd.f32 %v11876_v5, %v9510_v10 }
 0x7d6   : > { %9714 = vst [vmem:[%s11883_s30 + $0x21] ss:$2 sm:$0xff] %v9610_v13  ;;  %9717 = vst [vmem:[%s11883_s30 + $0x51] ss:$2 sm:$0xff] %v9613_v16 }
 0x7d7   : > { %v9507_v50 = vpop.xlane.xlu0 %9506 }
 0x7d8   : > { %v9612_v63 = vadd.f32 %v11876_v5, %v9507_v50 }
 0x7da   : > { %9716 = vst [vmem:[%s11883_s30 + $0x41] ss:$2 sm:$0xff] %v9612_v63 }
 0x7db PF: > { %s13_s12 = sadd.s32 1, %s11145_s12  }
 0x7dc   : > { %p10_p4 = scmp.ge.s32.totalorder %s13_s12, 4  }
 0x7de   :  { %12 = sbr.rel (!%p10_p4) target bundleno = 1 (0x1), region = 124 }

</bundles_post_ra>
